<compile_context>
chip_gen: v7x
topology: tpu7x:2x2x1
jax: 0.10.0
libtpu: 0.0.40
codegen_flags: <defaults>
</compile_context>

<pallas_src>
import functools

import jax
import jax.numpy as jnp
from jax.experimental import pallas as pl
from jax.experimental.pallas import tpu as pltpu

# ----------------- small config, structurally faithful to dinov2_vits14 -----------------
BATCH = 2
IN_CH = 3
IMG = 16           # (224 in the real model)
PATCH = 4          # (14 in the real model)
EMBED = 32         # (384)
HEADS = 2          # (6)
HEAD_DIM = EMBED // HEADS
DEPTH = 2          # (12)
MLP_HIDDEN = 4 * EMBED
NUM_CLASSES = 8    # (1000 default in LinearClassifier)
LN_EPS = 1e-6      # dinov2 uses LayerNorm(eps=1e-6)

N_PATCH = (IMG // PATCH) ** 2            # 16 patch tokens
N_TOK = N_PATCH + 1                      # 17 = cls + patches
N_PAD = ((N_TOK + 7) // 8) * 8           # 24 : sublane-aligned token count
PATCH_DIM = IN_CH * PATCH * PATCH        # 48
CLS_PAD = 128                            # lane-dense classifier output width


# --------------------------------- in-kernel helpers ------------------------------------
def _ln(x, g, b, eps):
    """Row-wise LayerNorm over the feature (lane) axis; x:(R,D), g/b:(1,D)."""
    mu = jnp.mean(x, axis=-1, keepdims=True)
    xc = x - mu
    var = jnp.mean(xc * xc, axis=-1, keepdims=True)
    return xc * jax.lax.rsqrt(var + eps) * g + b


def _erf(x):
    # Abramowitz & Stegun 7.1.26 polynomial erf (|err| < 1.5e-7): reproduces the exact-erf
    # GELU (PyTorch nn.GELU default) using only exp / mul / add, which all lower on Mosaic.
    a1, a2, a3, a4, a5 = 0.254829592, -0.284496736, 1.421413741, -1.453152027, 1.061405429
    pc = 0.3275911
    sgn = jnp.where(x >= 0.0, 1.0, -1.0)
    z = jnp.abs(x)
    t = 1.0 / (1.0 + pc * z)
    poly = ((((a5 * t + a4) * t + a3) * t + a2) * t + a1) * t
    return sgn * (1.0 - poly * jnp.exp(-z * z))


def _gelu(x):
    return 0.5 * x * (1.0 + _erf(x * 0.7071067811865476))


# ----------------------------------- Pallas kernels -------------------------------------
def _embed_kernel(p_ref, w_ref, b_ref, pos_ref, o_ref):
    """Patch-embed conv (as matmul) + bias + positional embedding, per batch element."""
    pe = jnp.dot(p_ref[0].astype(jnp.bfloat16), w_ref[...],
                 preferred_element_type=jnp.float32) + b_ref[...]
    o_ref[0] = (pe + pos_ref[...]).astype(o_ref.dtype)


def embed_patches(patches, patch_w, patch_b, pos_patch):
    """patches: (B, N_PATCH, PATCH_DIM) -> (B, N_PATCH, EMBED)."""
    B = patches.shape[0]
    return pl.pallas_call(
        _embed_kernel,
        out_shape=jax.ShapeDtypeStruct((B, N_PATCH, EMBED), jnp.float32),
        grid=(B,),
        in_specs=[
            pl.BlockSpec((1, N_PATCH, PATCH_DIM), lambda b: (b, 0, 0)),
            pl.BlockSpec((PATCH_DIM, EMBED), lambda b: (0, 0)),
            pl.BlockSpec((1, EMBED), lambda b: (0, 0)),
            pl.BlockSpec((N_PATCH, EMBED), lambda b: (0, 0)),
        ],
        out_specs=pl.BlockSpec((1, N_PATCH, EMBED), lambda b: (b, 0, 0)),
        compiler_params=pltpu.CompilerParams(dimension_semantics=("parallel",)),
    )(patches, patch_w, patch_b, pos_patch)


def _block_kernel(x_ref,
                  ln1_g, ln1_b, qkv_w, qkv_b, proj_w, proj_b, ls1,
                  ln2_g, ln2_b, fc1_w, fc1_b, fc2_w, fc2_b, ls2,
                  o_ref, *, n_real, heads, head_dim, eps):
    """One full ViT block for one batch element: LN1 -> QKV -> MHSA -> proj -> LS+res ->
    LN2 -> fc1 -> GELU -> fc2 -> LS+res. All matmuls bf16 in / f32 accumulate."""
    f32, bf16 = jnp.float32, jnp.bfloat16
    x = x_ref[0].astype(f32)                     # (N_PAD, D)
    n_pad, d = x.shape

    # ---- attention branch ----
    h = _ln(x, ln1_g[...], ln1_b[...], eps)
    qkv = jnp.dot(h.astype(bf16), qkv_w[...],
                  preferred_element_type=f32) + qkv_b[...]     # (N_PAD, 3D)

    scale = head_dim ** -0.5
    key_ids = jax.lax.broadcasted_iota(jnp.int32, (n_pad, n_pad), 1)
    key_mask = key_ids < n_real                                 # mask padded key columns

    heads_out = []
    for hh in range(heads):                                     # static unroll over heads
        c0 = hh * head_dim
        q = qkv[:, c0:c0 + head_dim] * scale
        k = qkv[:, d + c0:d + c0 + head_dim]
        v = qkv[:, 2 * d + c0:2 * d + c0 + head_dim]
        # scores = q @ k^T (contract last dims, no explicit transpose)
        s = jax.lax.dot_general(q.astype(bf16), k.astype(bf16),
                                (((1,), (1,)), ((), ())),
                                preferred_element_type=f32)
        s = jnp.where(key_mask, s, -1e30)
        s = s - jnp.max(s, axis=-1, keepdims=True)
        p = jnp.exp(s)
        p = p * pl.reciprocal(jnp.sum(p, axis=-1, keepdims=True), approx=True)
        heads_out.append(jnp.dot(p.astype(bf16), v.astype(bf16),
                                 preferred_element_type=f32))
    attn = jnp.concatenate(heads_out, axis=-1)                  # (N_PAD, D)

    proj = jnp.dot(attn.astype(bf16), proj_w[...],
                   preferred_element_type=f32) + proj_b[...]
    x = x + proj * ls1[...]                                     # LayerScale + residual

    # ---- MLP branch ----
    h = _ln(x, ln2_g[...], ln2_b[...], eps)
    h = jnp.dot(h.astype(bf16), fc1_w[...],
                preferred_element_type=f32) + fc1_b[...]
    h = _gelu(h)                                                # fused exact-erf GELU
    h = jnp.dot(h.astype(bf16), fc2_w[...],
                preferred_element_type=f32) + fc2_b[...]
    x = x + h * ls2[...]                                        # LayerScale + residual

    o_ref[0] = x.astype(o_ref.dtype)


def transformer_block(x, blk):
    """x: (B, N_PAD, EMBED) -> (B, N_PAD, EMBED); one fused kernel, grid over batch."""
    B = x.shape[0]
    D, Hm = EMBED, MLP_HIDDEN
    vec = lambda: pl.BlockSpec((1, D), lambda b: (0, 0))   # weight vectors, VMEM-resident
    kernel = functools.partial(_block_kernel, n_real=N_TOK, heads=HEADS,
                               head_dim=HEAD_DIM, eps=LN_EPS)
    return pl.pallas_call(
        kernel,
        out_shape=jax.ShapeDtypeStruct((B, N_PAD, D), jnp.float32),
        grid=(B,),
        in_specs=[
            pl.BlockSpec((1, N_PAD, D), lambda b: (b, 0, 0)),     # x
            vec(), vec(),                                         # ln1 gamma/beta
            pl.BlockSpec((D, 3 * D), lambda b: (0, 0)),           # qkv_w (bf16)
            pl.BlockSpec((1, 3 * D), lambda b: (0, 0)),           # qkv_b
            pl.BlockSpec((D, D), lambda b: (0, 0)),               # proj_w (bf16)
            vec(),                                                # proj_b
            vec(),                                                # ls1
            vec(), vec(),                                         # ln2 gamma/beta
            pl.BlockSpec((D, Hm), lambda b: (0, 0)),              # fc1_w (bf16)
            pl.BlockSpec((1, Hm), lambda b: (0, 0)),              # fc1_b
            pl.BlockSpec((Hm, D), lambda b: (0, 0)),              # fc2_w (bf16)
            vec(),                                                # fc2_b
            vec(),                                                # ls2
        ],
        out_specs=pl.BlockSpec((1, N_PAD, D), lambda b: (b, 0, 0)),
        compiler_params=pltpu.CompilerParams(dimension_semantics=("parallel",)),
    )(x,
      blk["ln1_g"], blk["ln1_b"], blk["qkv_w"], blk["qkv_b"],
      blk["proj_w"], blk["proj_b"], blk["ls1_g"],
      blk["ln2_g"], blk["ln2_b"], blk["fc1_w"], blk["fc1_b"],
      blk["fc2_w"], blk["fc2_b"], blk["ls2_g"])


def _head_kernel(x_ref, g_ref, b_ref, w_ref, hb_ref, o_ref, *, n_real, eps):
    """Final LN + create_linear_input(use_n_blocks=1, use_avgpool=True) + classifier."""
    x = x_ref[0].astype(jnp.float32)                        # (N_PAD, D)
    xn = _ln(x, g_ref[...], b_ref[...], eps)
    cls = xn[0:1, :]                                        # class token
    row_ids = jax.lax.broadcasted_iota(jnp.int32, (xn.shape[0], 1), 0)
    pmask = jnp.logical_and(row_ids >= 1, row_ids < n_real).astype(jnp.float32)
    avg = jnp.sum(xn * pmask, axis=0, keepdims=True) / float(n_real - 1)
    feat = jnp.concatenate([cls, avg], axis=-1)             # (1, 2D)
    # classifier kept fp32 (it is outside the autocast region in the PyTorch module);
    # output lane-padded to CLS_PAD for a dense store, sliced to NUM_CLASSES outside.
    logits = jnp.dot(feat, w_ref[...], preferred_element_type=jnp.float32) + hb_ref[...]
    o_ref[0] = logits


def classifier_head(x, norm_g, norm_b, head_w_pad, head_b_pad):
    """x: (B, N_PAD, EMBED) -> logits (B, NUM_CLASSES)."""
    B = x.shape[0]
    D = EMBED
    out = pl.pallas_call(
        functools.partial(_head_kernel, n_real=N_TOK, eps=LN_EPS),
        out_shape=jax.ShapeDtypeStruct((B, 1, CLS_PAD), jnp.float32),
        grid=(B,),
        in_specs=[
            pl.BlockSpec((1, N_PAD, D), lambda b: (b, 0, 0)),
            pl.BlockSpec((1, D), lambda b: (0, 0)),
            pl.BlockSpec((1, D), lambda b: (0, 0)),
            pl.BlockSpec((2 * D, CLS_PAD), lambda b: (0, 0)),
            pl.BlockSpec((1, CLS_PAD), lambda b: (0, 0)),
        ],
        out_specs=pl.BlockSpec((1, 1, CLS_PAD), lambda b: (b, 0, 0)),
        compiler_params=pltpu.CompilerParams(dimension_semantics=("parallel",)),
    )(x, norm_g, norm_b, head_w_pad, head_b_pad)
    return out.reshape(B, CLS_PAD)[:, :NUM_CLASSES]


# --------------------------------- parameter init ---------------------------------------
def init_params(key):
    def nxt():
        nonlocal key
        key, sub = jax.random.split(key)
        return sub

    bf16 = jnp.bfloat16
    p = {}
    # backbone matmul weights stored bf16 (fp16-autocast intent); biases/LN/LS stay fp32.
    p["patch_w"] = (0.02 * jax.random.normal(nxt(), (PATCH_DIM, EMBED), jnp.float32)).astype(bf16)
    p["patch_b"] = jnp.zeros((1, EMBED), jnp.float32)
    p["cls_token"] = 0.02 * jax.random.normal(nxt(), (1, EMBED), jnp.float32)
    p["pos_embed"] = 0.02 * jax.random.normal(nxt(), (N_TOK, EMBED), jnp.float32)
    blocks = []
    for _ in range(DEPTH):
        blocks.append({
            "ln1_g": jnp.ones((1, EMBED), jnp.float32),
            "ln1_b": jnp.zeros((1, EMBED), jnp.float32),
            "qkv_w": (0.02 * jax.random.normal(nxt(), (EMBED, 3 * EMBED), jnp.float32)).astype(bf16),
            "qkv_b": jnp.zeros((1, 3 * EMBED), jnp.float32),
            "proj_w": (0.02 * jax.random.normal(nxt(), (EMBED, EMBED), jnp.float32)).astype(bf16),
            "proj_b": jnp.zeros((1, EMBED), jnp.float32),
            "ls1_g": jnp.ones((1, EMBED), jnp.float32),   # LayerScale init_values=1.0
            "ln2_g": jnp.ones((1, EMBED), jnp.float32),
            "ln2_b": jnp.zeros((1, EMBED), jnp.float32),
            "fc1_w": (0.02 * jax.random.normal(nxt(), (EMBED, MLP_HIDDEN), jnp.float32)).astype(bf16),
            "fc1_b": jnp.zeros((1, MLP_HIDDEN), jnp.float32),
            "fc2_w": (0.02 * jax.random.normal(nxt(), (MLP_HIDDEN, EMBED), jnp.float32)).astype(bf16),
            "fc2_b": jnp.zeros((1, EMBED), jnp.float32),
            "ls2_g": jnp.ones((1, EMBED), jnp.float32),   # LayerScale init_values=1.0
        })
    p["blocks"] = blocks
    p["norm_g"] = jnp.ones((1, EMBED), jnp.float32)
    p["norm_b"] = jnp.zeros((1, EMBED), jnp.float32)
    head_w = 0.01 * jax.random.normal(nxt(), (2 * EMBED, NUM_CLASSES), jnp.float32)
    p["head_w"] = jnp.pad(head_w, ((0, 0), (0, CLS_PAD - NUM_CLASSES)))   # lane-padded
    p["head_b"] = jnp.zeros((1, CLS_PAD), jnp.float32)
    return p


# ------------------------------------ forward pass --------------------------------------
def dino_forward(params, x):
    # layout: x is NCHW (B, C, H, W), matching the PyTorch conv input.
    B, C, H, W = x.shape
    Hn, Wn = H // PATCH, W // PATCH

    # Patch-embed Conv2d(kernel=stride=PATCH) as a matmul over flattened (C, p, p) patches.
    patches = (x.reshape(B, C, Hn, PATCH, Wn, PATCH)
                 .transpose(0, 2, 4, 1, 3, 5)
                 .reshape(B, Hn * Wn, C * PATCH * PATCH))

    pos_patch = params["pos_embed"][1:, :]                              # (N_PATCH, D)
    tok = embed_patches(patches, params["patch_w"], params["patch_b"], pos_patch)

    # cls token (+ its pos embed) prepend and sublane padding: one-time, tiny layout glue.
    cls_row = jnp.broadcast_to(params["cls_token"] + params["pos_embed"][0:1, :],
                               (B, 1, EMBED))
    xt = jnp.concatenate([cls_row, tok], axis=1)                        # (B, N_TOK, D)
    xt = jnp.pad(xt, ((0, 0), (0, N_PAD - N_TOK), (0, 0)))              # (B, N_PAD, D)

    for blk in params["blocks"]:
        xt = transformer_block(xt, blk)

    # final LN (get_intermediate_layers(norm=True)) + concat(cls, avgpool) + Linear
    return classifier_head(xt, params["norm_g"], params["norm_b"],
                           params["head_w"], params["head_b"])


# ----------------------------------------- main -----------------------------------------
if __name__ == "__main__":
    root = jax.random.PRNGKey(0)
    pkey, xkey = jax.random.split(root)
    params = init_params(pkey)
    # layout: NCHW input, as the PyTorch module expects.
    x = jax.random.normal(xkey, (BATCH, IN_CH, IMG, IMG), jnp.float32)

    logits = jax.jit(dino_forward)(params, x)
    jax.block_until_ready(logits)
    assert logits.shape == (BATCH, NUM_CLASSES)
    assert logits.dtype == jnp.float32
    print("KERNEL_OK")
</pallas_src>

<mosaic_0001>
module attributes {stable_mosaic.version = 11 : i64} {
  func.func @_embed_kernel(%arg0: i32, %arg1: memref<1x16x48xf32, #tpu.memory_space<vmem>>, %arg2: memref<48x32xbf16, #tpu.memory_space<vmem>>, %arg3: memref<1x32xf32, #tpu.memory_space<vmem>>, %arg4: memref<16x32xf32, #tpu.memory_space<vmem>>, %arg5: memref<1x16x32xf32, #tpu.memory_space<vmem>>) attributes {dimension_semantics = [#tpu.dimension_semantics<parallel>], iteration_bounds = array<i64: 2>, scalar_prefetch = 0 : i64, scratch_operands = 0 : i64, tpu.core_type = #tpu.core_type<tc>, window_params = [{transform_indices = @transform_0, window_bounds = array<i64: 1, 16, 48>}, {pipeline_mode = #tpu.pipeline_mode<synchronous>, transform_indices = @transform_1, window_bounds = array<i64: 48, 32>}, {pipeline_mode = #tpu.pipeline_mode<synchronous>, transform_indices = @transform_2, window_bounds = array<i64: 1, 32>}, {pipeline_mode = #tpu.pipeline_mode<synchronous>, transform_indices = @transform_3, window_bounds = array<i64: 16, 32>}, {transform_indices = @transform_4, window_bounds = array<i64: 1, 16, 32>}]} {
    %c0 = arith.constant 0 : index
    %c0_0 = arith.constant 0 : index
    %c0_1 = arith.constant 0 : index
    %0 = vector.load %arg1[%c0, %c0_0, %c0_1] : memref<1x16x48xf32, #tpu.memory_space<vmem>>, vector<1x16x48xf32>
    %1 = vector.shape_cast %0 : vector<1x16x48xf32> to vector<16x48xf32>
    %2 = arith.truncf %1 : vector<16x48xf32> to vector<16x48xbf16>
    %c0_2 = arith.constant 0 : index
    %c0_3 = arith.constant 0 : index
    %3 = vector.load %arg2[%c0_2, %c0_3] : memref<48x32xbf16, #tpu.memory_space<vmem>>, vector<48x32xbf16>
    %cst = arith.constant dense<0.000000e+00> : vector<16x32xf32>
    %4 = tpu.matmul %2, %3, %cst {dimension_numbers = #tpu.dot_dimension_numbers<[1], [0], [0], [1], [0, 0, 1, 1], [], []>} : vector<16x48xbf16>, vector<48x32xbf16>, vector<16x32xf32> -> vector<16x32xf32>
    %c0_4 = arith.constant 0 : index
    %c0_5 = arith.constant 0 : index
    %5 = vector.load %arg3[%c0_4, %c0_5] : memref<1x32xf32, #tpu.memory_space<vmem>>, vector<1x32xf32>
    %6 = vector.broadcast %5 : vector<1x32xf32> to vector<16x32xf32>
    %7 = arith.addf %4, %6 : vector<16x32xf32>
    %c0_6 = arith.constant 0 : index
    %c0_7 = arith.constant 0 : index
    %8 = vector.load %arg4[%c0_6, %c0_7] : memref<16x32xf32, #tpu.memory_space<vmem>>, vector<16x32xf32>
    %9 = arith.addf %7, %8 : vector<16x32xf32>
    %c0_8 = arith.constant 0 : index
    %c0_9 = arith.constant 0 : index
    %c0_10 = arith.constant 0 : index
    %10 = vector.load %arg5[%c0_8, %c0_9, %c0_10] : memref<1x16x32xf32, #tpu.memory_space<vmem>>, vector<1x16x32xf32>
    %11 = vector.shape_cast %10 : vector<1x16x32xf32> to vector<16x32xf32>
    %12 = vector.shape_cast %9 : vector<16x32xf32> to vector<1x16x32xf32>
    tpu.vector_store %arg5[%c0_8, %c0_9, %c0_10], %12 {strides = array<i32>} : memref<1x16x32xf32, #tpu.memory_space<vmem>>, vector<1x16x32xf32>,
    return
  }
  func.func @transform_0(%arg0: i32) -> (i32, i32, i32) {
    %c0_i32 = arith.constant 0 : i32
    %c0_i32_0 = arith.constant 0 : i32
    %c0_i32_1 = arith.constant 0 : i32
    return %arg0, %c0_i32, %c0_i32_0 : i32, i32, i32
  }
  func.func @transform_1(%arg0: i32) -> (i32, i32) {
    %c0_i32 = arith.constant 0 : i32
    %c0_i32_0 = arith.constant 0 : i32
    %c0_i32_1 = arith.constant 0 : i32
    return %c0_i32, %c0_i32_0 : i32, i32
  }
  func.func @transform_2(%arg0: i32) -> (i32, i32) {
    %c0_i32 = arith.constant 0 : i32
    %c0_i32_0 = arith.constant 0 : i32
    %c0_i32_1 = arith.constant 0 : i32
    return %c0_i32, %c0_i32_0 : i32, i32
  }
  func.func @transform_3(%arg0: i32) -> (i32, i32) {
    %c0_i32 = arith.constant 0 : i32
    %c0_i32_0 = arith.constant 0 : i32
    %c0_i32_1 = arith.constant 0 : i32
    return %c0_i32, %c0_i32_0 : i32, i32
  }
  func.func @transform_4(%arg0: i32) -> (i32, i32, i32) {
    %c0_i32 = arith.constant 0 : i32
    %c0_i32_0 = arith.constant 0 : i32
    %c0_i32_1 = arith.constant 0 : i32
    return %arg0, %c0_i32, %c0_i32_0 : i32, i32, i32
  }
}

module attributes {stable_mosaic.version = 11 : i64} {
  func.func @_block_kernel(%arg0: i32, %arg1: memref<1x24x32xf32, #tpu.memory_space<vmem>>, %arg2: memref<1x32xf32, #tpu.memory_space<vmem>>, %arg3: memref<1x32xf32, #tpu.memory_space<vmem>>, %arg4: memref<32x96xbf16, #tpu.memory_space<vmem>>, %arg5: memref<1x96xf32, #tpu.memory_space<vmem>>, %arg6: memref<32x32xbf16, #tpu.memory_space<vmem>>, %arg7: memref<1x32xf32, #tpu.memory_space<vmem>>, %arg8: memref<1x32xf32, #tpu.memory_space<vmem>>, %arg9: memref<1x32xf32, #tpu.memory_space<vmem>>, %arg10: memref<1x32xf32, #tpu.memory_space<vmem>>, %arg11: memref<32x128xbf16, #tpu.memory_space<vmem>>, %arg12: memref<1x128xf32, #tpu.memory_space<vmem>>, %arg13: memref<128x32xbf16, #tpu.memory_space<vmem>>, %arg14: memref<1x32xf32, #tpu.memory_space<vmem>>, %arg15: memref<1x32xf32, #tpu.memory_space<vmem>>, %arg16: memref<1x24x32xf32, #tpu.memory_space<vmem>>) attributes {dimension_semantics = [#tpu.dimension_semantics<parallel>], iteration_bounds = array<i64: 2>, scalar_prefetch = 0 : i64, scratch_operands = 0 : i64, tpu.core_type = #tpu.core_type<tc>, window_params = [{transform_indices = @transform_0, window_bounds = array<i64: 1, 24, 32>}, {pipeline_mode = #tpu.pipeline_mode<synchronous>, transform_indices = @transform_1, window_bounds = array<i64: 1, 32>}, {pipeline_mode = #tpu.pipeline_mode<synchronous>, transform_indices = @transform_2, window_bounds = array<i64: 1, 32>}, {pipeline_mode = #tpu.pipeline_mode<synchronous>, transform_indices = @transform_3, window_bounds = array<i64: 32, 96>}, {pipeline_mode = #tpu.pipeline_mode<synchronous>, transform_indices = @transform_4, window_bounds = array<i64: 1, 96>}, {pipeline_mode = #tpu.pipeline_mode<synchronous>, transform_indices = @transform_5, window_bounds = array<i64: 32, 32>}, {pipeline_mode = #tpu.pipeline_mode<synchronous>, transform_indices = @transform_6, window_bounds = array<i64: 1, 32>}, {pipeline_mode = #tpu.pipeline_mode<synchronous>, transform_indices = @transform_7, window_bounds = array<i64: 1, 32>}, {pipeline_mode = #tpu.pipeline_mode<synchronous>, transform_indices = @transform_8, window_bounds = array<i64: 1, 32>}, {pipeline_mode = #tpu.pipeline_mode<synchronous>, transform_indices = @transform_9, window_bounds = array<i64: 1, 32>}, {pipeline_mode = #tpu.pipeline_mode<synchronous>, transform_indices = @transform_10, window_bounds = array<i64: 32, 128>}, {pipeline_mode = #tpu.pipeline_mode<synchronous>, transform_indices = @transform_11, window_bounds = array<i64: 1, 128>}, {pipeline_mode = #tpu.pipeline_mode<synchronous>, transform_indices = @transform_12, window_bounds = array<i64: 128, 32>}, {pipeline_mode = #tpu.pipeline_mode<synchronous>, transform_indices = @transform_13, window_bounds = array<i64: 1, 32>}, {pipeline_mode = #tpu.pipeline_mode<synchronous>, transform_indices = @transform_14, window_bounds = array<i64: 1, 32>}, {transform_indices = @transform_15, window_bounds = array<i64: 1, 24, 32>}]} {
    %c0 = arith.constant 0 : index
    %c0_0 = arith.constant 0 : index
    %c0_1 = arith.constant 0 : index
    %0 = vector.load %arg1[%c0, %c0_0, %c0_1] : memref<1x24x32xf32, #tpu.memory_space<vmem>>, vector<1x24x32xf32>
    %1 = vector.shape_cast %0 : vector<1x24x32xf32> to vector<24x32xf32>
    %c0_2 = arith.constant 0 : index
    %c0_3 = arith.constant 0 : index
    %2 = vector.load %arg2[%c0_2, %c0_3] : memref<1x32xf32, #tpu.memory_space<vmem>>, vector<1x32xf32>
    %c0_4 = arith.constant 0 : index
    %c0_5 = arith.constant 0 : index
    %3 = vector.load %arg3[%c0_4, %c0_5] : memref<1x32xf32, #tpu.memory_space<vmem>>, vector<1x32xf32>
    %cst = arith.constant dense<0.000000e+00> : vector<24xf32>
    %4 = vector.multi_reduction <add>, %1, %cst [1] : vector<24x32xf32> to vector<24xf32>
    %5 = vector.shape_cast %4 : vector<24xf32> to vector<24x1xf32>
    %cst_6 = arith.constant 3.200000e+01 : f32
    %6 = vector.broadcast %cst_6 : f32 to vector<24x1xf32>
    %7 = arith.divf %5, %6 : vector<24x1xf32>
    %8 = vector.broadcast %7 : vector<24x1xf32> to vector<24x32xf32>
    %9 = arith.subf %1, %8 : vector<24x32xf32>
    %10 = arith.mulf %9, %9 : vector<24x32xf32>
    %cst_7 = arith.constant dense<0.000000e+00> : vector<24xf32>
    %11 = vector.multi_reduction <add>, %10, %cst_7 [1] : vector<24x32xf32> to vector<24xf32>
    %12 = vector.shape_cast %11 : vector<24xf32> to vector<24x1xf32>
    %cst_8 = arith.constant 3.200000e+01 : f32
    %13 = vector.broadcast %cst_8 : f32 to vector<24x1xf32>
    %14 = arith.divf %12, %13 : vector<24x1xf32>
    %cst_9 = arith.constant 9.99999997E-7 : f32
    %15 = vector.broadcast %cst_9 : f32 to vector<24x1xf32>
    %16 = arith.addf %14, %15 : vector<24x1xf32>
    %17 = math.rsqrt %16 : vector<24x1xf32>
    %18 = vector.broadcast %17 : vector<24x1xf32> to vector<24x32xf32>
    %19 = arith.mulf %9, %18 : vector<24x32xf32>
    %20 = vector.broadcast %2 : vector<1x32xf32> to vector<24x32xf32>
    %21 = arith.mulf %19, %20 : vector<24x32xf32>
    %22 = vector.broadcast %3 : vector<1x32xf32> to vector<24x32xf32>
    %23 = arith.addf %21, %22 : vector<24x32xf32>
    %24 = arith.truncf %23 : vector<24x32xf32> to vector<24x32xbf16>
    %c0_10 = arith.constant 0 : index
    %c0_11 = arith.constant 0 : index
    %25 = vector.load %arg4[%c0_10, %c0_11] : memref<32x96xbf16, #tpu.memory_space<vmem>>, vector<32x96xbf16>
    %cst_12 = arith.constant dense<0.000000e+00> : vector<24x96xf32>
    %26 = tpu.matmul %24, %25, %cst_12 {dimension_numbers = #tpu.dot_dimension_numbers<[1], [0], [0], [1], [0, 0, 1, 1], [], []>} : vector<24x32xbf16>, vector<32x96xbf16>, vector<24x96xf32> -> vector<24x96xf32>
    %c0_13 = arith.constant 0 : index
    %c0_14 = arith.constant 0 : index
    %27 = vector.load %arg5[%c0_13, %c0_14] : memref<1x96xf32, #tpu.memory_space<vmem>>, vector<1x96xf32>
    %28 = vector.broadcast %27 : vector<1x96xf32> to vector<24x96xf32>
    %29 = arith.addf %26, %28 : vector<24x96xf32>
    %30 = tpu.iota {dimensions = array<i32: 1>} : vector<24x24xi32>
    %c17_i32 = arith.constant 17 : i32
    %31 = vector.broadcast %c17_i32 : i32 to vector<24x24xi32>
    %32 = arith.cmpi slt, %30, %31 : vector<24x24xi32>
    %33 = vector.extract_strided_slice %29 {offsets = [0, 0], sizes = [24, 16], strides = [1, 1]} : vector<24x96xf32> to vector<24x16xf32>
    %cst_15 = arith.constant 2.500000e-01 : f32
    %34 = vector.broadcast %cst_15 : f32 to vector<24x16xf32>
    %35 = arith.mulf %33, %34 : vector<24x16xf32>
    %36 = vector.extract_strided_slice %29 {offsets = [0, 32], sizes = [24, 16], strides = [1, 1]} : vector<24x96xf32> to vector<24x16xf32>
    %37 = vector.extract_strided_slice %29 {offsets = [0, 64], sizes = [24, 16], strides = [1, 1]} : vector<24x96xf32> to vector<24x16xf32>
    %38 = arith.truncf %35 : vector<24x16xf32> to vector<24x16xbf16>
    %39 = arith.truncf %36 : vector<24x16xf32> to vector<24x16xbf16>
    %cst_16 = arith.constant dense<0.000000e+00> : vector<24x24xf32>
    %40 = tpu.matmul %38, %39, %cst_16 {dimension_numbers = #tpu.dot_dimension_numbers<[1], [1], [0], [0], [0, 0, 1, 0], [], []>} : vector<24x16xbf16>, vector<24x16xbf16>, vector<24x24xf32> -> vector<24x24xf32>
    %cst_17 = arith.constant -1.000000e+30 : f32
    %41 = vector.broadcast %cst_17 : f32 to vector<24x24xf32>
    %42 = arith.select %32, %40, %41 : vector<24x24xi1>, vector<24x24xf32>
    %cst_18 = arith.constant dense<0xFF800000> : vector<24xf32>
    %43 = vector.multi_reduction <maximumf>, %42, %cst_18 [1] : vector<24x24xf32> to vector<24xf32>
    %44 = vector.shape_cast %43 : vector<24xf32> to vector<24x1xf32>
    %45 = vector.broadcast %44 : vector<24x1xf32> to vector<24x24xf32>
    %46 = arith.subf %42, %45 : vector<24x24xf32>
    %47 = math.exp %46 : vector<24x24xf32>
    %cst_19 = arith.constant dense<0.000000e+00> : vector<24xf32>
    %48 = vector.multi_reduction <add>, %47, %cst_19 [1] : vector<24x24xf32> to vector<24xf32>
    %49 = vector.shape_cast %48 : vector<24xf32> to vector<24x1xf32>
    %50 = tpu.reciprocal %49 {approx = true} : vector<24x1xf32> -> vector<24x1xf32>
    %51 = vector.broadcast %50 : vector<24x1xf32> to vector<24x24xf32>
    %52 = arith.mulf %47, %51 : vector<24x24xf32>
    %53 = arith.truncf %52 : vector<24x24xf32> to vector<24x24xbf16>
    %54 = arith.truncf %37 : vector<24x16xf32> to vector<24x16xbf16>
    %cst_20 = arith.constant dense<0.000000e+00> : vector<24x16xf32>
    %55 = tpu.matmul %53, %54, %cst_20 {dimension_numbers = #tpu.dot_dimension_numbers<[1], [0], [0], [1], [0, 0, 1, 1], [], []>} : vector<24x24xbf16>, vector<24x16xbf16>, vector<24x16xf32> -> vector<24x16xf32>
    %56 = vector.extract_strided_slice %29 {offsets = [0, 16], sizes = [24, 16], strides = [1, 1]} : vector<24x96xf32> to vector<24x16xf32>
    %cst_21 = arith.constant 2.500000e-01 : f32
    %57 = vector.broadcast %cst_21 : f32 to vector<24x16xf32>
    %58 = arith.mulf %56, %57 : vector<24x16xf32>
    %59 = vector.extract_strided_slice %29 {offsets = [0, 48], sizes = [24, 16], strides = [1, 1]} : vector<24x96xf32> to vector<24x16xf32>
    %60 = vector.extract_strided_slice %29 {offsets = [0, 80], sizes = [24, 16], strides = [1, 1]} : vector<24x96xf32> to vector<24x16xf32>
    %61 = arith.truncf %58 : vector<24x16xf32> to vector<24x16xbf16>
    %62 = arith.truncf %59 : vector<24x16xf32> to vector<24x16xbf16>
    %cst_22 = arith.constant dense<0.000000e+00> : vector<24x24xf32>
    %63 = tpu.matmul %61, %62, %cst_22 {dimension_numbers = #tpu.dot_dimension_numbers<[1], [1], [0], [0], [0, 0, 1, 0], [], []>} : vector<24x16xbf16>, vector<24x16xbf16>, vector<24x24xf32> -> vector<24x24xf32>
    %cst_23 = arith.constant -1.000000e+30 : f32
    %64 = vector.broadcast %cst_23 : f32 to vector<24x24xf32>
    %65 = arith.select %32, %63, %64 : vector<24x24xi1>, vector<24x24xf32>
    %cst_24 = arith.constant dense<0xFF800000> : vector<24xf32>
    %66 = vector.multi_reduction <maximumf>, %65, %cst_24 [1] : vector<24x24xf32> to vector<24xf32>
    %67 = vector.shape_cast %66 : vector<24xf32> to vector<24x1xf32>
    %68 = vector.broadcast %67 : vector<24x1xf32> to vector<24x24xf32>
    %69 = arith.subf %65, %68 : vector<24x24xf32>
    %70 = math.exp %69 : vector<24x24xf32>
    %cst_25 = arith.constant dense<0.000000e+00> : vector<24xf32>
    %71 = vector.multi_reduction <add>, %70, %cst_25 [1] : vector<24x24xf32> to vector<24xf32>
    %72 = vector.shape_cast %71 : vector<24xf32> to vector<24x1xf32>
    %73 = tpu.reciprocal %72 {approx = true} : vector<24x1xf32> -> vector<24x1xf32>
    %74 = vector.broadcast %73 : vector<24x1xf32> to vector<24x24xf32>
    %75 = arith.mulf %70, %74 : vector<24x24xf32>
    %76 = arith.truncf %75 : vector<24x24xf32> to vector<24x24xbf16>
    %77 = arith.truncf %60 : vector<24x16xf32> to vector<24x16xbf16>
    %cst_26 = arith.constant dense<0.000000e+00> : vector<24x16xf32>
    %78 = tpu.matmul %76, %77, %cst_26 {dimension_numbers = #tpu.dot_dimension_numbers<[1], [0], [0], [1], [0, 0, 1, 1], [], []>} : vector<24x24xbf16>, vector<24x16xbf16>, vector<24x16xf32> -> vector<24x16xf32>
    %79 = tpu.concatenate %55, %78 in 1 : vector<24x16xf32>, vector<24x16xf32> -> vector<24x32xf32>
    %80 = arith.truncf %79 : vector<24x32xf32> to vector<24x32xbf16>
    %c0_27 = arith.constant 0 : index
    %c0_28 = arith.constant 0 : index
    %81 = vector.load %arg6[%c0_27, %c0_28] : memref<32x32xbf16, #tpu.memory_space<vmem>>, vector<32x32xbf16>
    %cst_29 = arith.constant dense<0.000000e+00> : vector<24x32xf32>
    %82 = tpu.matmul %80, %81, %cst_29 {dimension_numbers = #tpu.dot_dimension_numbers<[1], [0], [0], [1], [0, 0, 1, 1], [], []>} : vector<24x32xbf16>, vector<32x32xbf16>, vector<24x32xf32> -> vector<24x32xf32>
    %c0_30 = arith.constant 0 : index
    %c0_31 = arith.constant 0 : index
    %83 = vector.load %arg7[%c0_30, %c0_31] : memref<1x32xf32, #tpu.memory_space<vmem>>, vector<1x32xf32>
    %84 = vector.broadcast %83 : vector<1x32xf32> to vector<24x32xf32>
    %85 = arith.addf %82, %84 : vector<24x32xf32>
    %c0_32 = arith.constant 0 : index
    %c0_33 = arith.constant 0 : index
    %86 = vector.load %arg8[%c0_32, %c0_33] : memref<1x32xf32, #tpu.memory_space<vmem>>, vector<1x32xf32>
    %87 = vector.broadcast %86 : vector<1x32xf32> to vector<24x32xf32>
    %88 = arith.mulf %85, %87 : vector<24x32xf32>
    %89 = arith.addf %1, %88 : vector<24x32xf32>
    %c0_34 = arith.constant 0 : index
    %c0_35 = arith.constant 0 : index
    %90 = vector.load %arg9[%c0_34, %c0_35] : memref<1x32xf32, #tpu.memory_space<vmem>>, vector<1x32xf32>
    %c0_36 = arith.constant 0 : index
    %c0_37 = arith.constant 0 : index
    %91 = vector.load %arg10[%c0_36, %c0_37] : memref<1x32xf32, #tpu.memory_space<vmem>>, vector<1x32xf32>
    %cst_38 = arith.constant dense<0.000000e+00> : vector<24xf32>
    %92 = vector.multi_reduction <add>, %89, %cst_38 [1] : vector<24x32xf32> to vector<24xf32>
    %93 = vector.shape_cast %92 : vector<24xf32> to vector<24x1xf32>
    %cst_39 = arith.constant 3.200000e+01 : f32
    %94 = vector.broadcast %cst_39 : f32 to vector<24x1xf32>
    %95 = arith.divf %93, %94 : vector<24x1xf32>
    %96 = vector.broadcast %95 : vector<24x1xf32> to vector<24x32xf32>
    %97 = arith.subf %89, %96 : vector<24x32xf32>
    %98 = arith.mulf %97, %97 : vector<24x32xf32>
    %cst_40 = arith.constant dense<0.000000e+00> : vector<24xf32>
    %99 = vector.multi_reduction <add>, %98, %cst_40 [1] : vector<24x32xf32> to vector<24xf32>
    %100 = vector.shape_cast %99 : vector<24xf32> to vector<24x1xf32>
    %cst_41 = arith.constant 3.200000e+01 : f32
    %101 = vector.broadcast %cst_41 : f32 to vector<24x1xf32>
    %102 = arith.divf %100, %101 : vector<24x1xf32>
    %cst_42 = arith.constant 9.99999997E-7 : f32
    %103 = vector.broadcast %cst_42 : f32 to vector<24x1xf32>
    %104 = arith.addf %102, %103 : vector<24x1xf32>
    %105 = math.rsqrt %104 : vector<24x1xf32>
    %106 = vector.broadcast %105 : vector<24x1xf32> to vector<24x32xf32>
    %107 = arith.mulf %97, %106 : vector<24x32xf32>
    %108 = vector.broadcast %90 : vector<1x32xf32> to vector<24x32xf32>
    %109 = arith.mulf %107, %108 : vector<24x32xf32>
    %110 = vector.broadcast %91 : vector<1x32xf32> to vector<24x32xf32>
    %111 = arith.addf %109, %110 : vector<24x32xf32>
    %112 = arith.truncf %111 : vector<24x32xf32> to vector<24x32xbf16>
    %c0_43 = arith.constant 0 : index
    %c0_44 = arith.constant 0 : index
    %113 = vector.load %arg11[%c0_43, %c0_44] : memref<32x128xbf16, #tpu.memory_space<vmem>>, vector<32x128xbf16>
    %cst_45 = arith.constant dense<0.000000e+00> : vector<24x128xf32>
    %114 = tpu.matmul %112, %113, %cst_45 {dimension_numbers = #tpu.dot_dimension_numbers<[1], [0], [0], [1], [0, 0, 1, 1], [], []>} : vector<24x32xbf16>, vector<32x128xbf16>, vector<24x128xf32> -> vector<24x128xf32>
    %c0_46 = arith.constant 0 : index
    %c0_47 = arith.constant 0 : index
    %115 = vector.load %arg12[%c0_46, %c0_47] : memref<1x128xf32, #tpu.memory_space<vmem>>, vector<1x128xf32>
    %116 = vector.broadcast %115 : vector<1x128xf32> to vector<24x128xf32>
    %117 = arith.addf %114, %116 : vector<24x128xf32>
    %cst_48 = arith.constant 5.000000e-01 : f32
    %118 = vector.broadcast %cst_48 : f32 to vector<24x128xf32>
    %119 = arith.mulf %118, %117 : vector<24x128xf32>
    %cst_49 = arith.constant 0.707106769 : f32
    %120 = vector.broadcast %cst_49 : f32 to vector<24x128xf32>
    %121 = arith.mulf %117, %120 : vector<24x128xf32>
    %cst_50 = arith.constant 0.000000e+00 : f32
    %122 = vector.broadcast %cst_50 : f32 to vector<24x128xf32>
    %123 = arith.cmpf oge, %121, %122 : vector<24x128xf32>
    %cst_51 = arith.constant 1.000000e+00 : f32
    %cst_52 = arith.constant -1.000000e+00 : f32
    %124 = vector.broadcast %cst_51 : f32 to vector<24x128xf32>
    %125 = vector.broadcast %cst_52 : f32 to vector<24x128xf32>
    %126 = arith.select %123, %124, %125 : vector<24x128xi1>, vector<24x128xf32>
    %127 = math.absf %121 : vector<24x128xf32>
    %cst_53 = arith.constant 0.327591091 : f32
    %128 = vector.broadcast %cst_53 : f32 to vector<24x128xf32>
    %129 = arith.mulf %128, %127 : vector<24x128xf32>
    %cst_54 = arith.constant 1.000000e+00 : f32
    %130 = vector.broadcast %cst_54 : f32 to vector<24x128xf32>
    %131 = arith.addf %130, %129 : vector<24x128xf32>
    %cst_55 = arith.constant 1.000000e+00 : f32
    %132 = vector.broadcast %cst_55 : f32 to vector<24x128xf32>
    %133 = arith.divf %132, %131 : vector<24x128xf32>
    %cst_56 = arith.constant 1.06140542 : f32
    %134 = vector.broadcast %cst_56 : f32 to vector<24x128xf32>
    %135 = arith.mulf %134, %133 : vector<24x128xf32>
    %cst_57 = arith.constant -1.45315206 : f32
    %136 = vector.broadcast %cst_57 : f32 to vector<24x128xf32>
    %137 = arith.addf %135, %136 : vector<24x128xf32>
    %138 = arith.mulf %137, %133 : vector<24x128xf32>
    %cst_58 = arith.constant 1.42141378 : f32
    %139 = vector.broadcast %cst_58 : f32 to vector<24x128xf32>
    %140 = arith.addf %138, %139 : vector<24x128xf32>
    %141 = arith.mulf %140, %133 : vector<24x128xf32>
    %cst_59 = arith.constant -0.284496725 : f32
    %142 = vector.broadcast %cst_59 : f32 to vector<24x128xf32>
    %143 = arith.addf %141, %142 : vector<24x128xf32>
    %144 = arith.mulf %143, %133 : vector<24x128xf32>
    %cst_60 = arith.constant 0.254829586 : f32
    %145 = vector.broadcast %cst_60 : f32 to vector<24x128xf32>
    %146 = arith.addf %144, %145 : vector<24x128xf32>
    %147 = arith.mulf %146, %133 : vector<24x128xf32>
    %cst_61 = arith.constant 0.000000e+00 : f32
    %148 = vector.broadcast %cst_61 : f32 to vector<24x128xf32>
    %149 = arith.subf %148, %127 : vector<24x128xf32>
    %150 = arith.mulf %149, %127 : vector<24x128xf32>
    %151 = math.exp %150 : vector<24x128xf32>
    %152 = arith.mulf %147, %151 : vector<24x128xf32>
    %cst_62 = arith.constant 1.000000e+00 : f32
    %153 = vector.broadcast %cst_62 : f32 to vector<24x128xf32>
    %154 = arith.subf %153, %152 : vector<24x128xf32>
    %155 = arith.mulf %126, %154 : vector<24x128xf32>
    %cst_63 = arith.constant 1.000000e+00 : f32
    %156 = vector.broadcast %cst_63 : f32 to vector<24x128xf32>
    %157 = arith.addf %156, %155 : vector<24x128xf32>
    %158 = arith.mulf %119, %157 : vector<24x128xf32>
    %159 = arith.truncf %158 : vector<24x128xf32> to vector<24x128xbf16>
    %c0_64 = arith.constant 0 : index
    %c0_65 = arith.constant 0 : index
    %160 = vector.load %arg13[%c0_64, %c0_65] : memref<128x32xbf16, #tpu.memory_space<vmem>>, vector<128x32xbf16>
    %cst_66 = arith.constant dense<0.000000e+00> : vector<24x32xf32>
    %161 = tpu.matmul %159, %160, %cst_66 {dimension_numbers = #tpu.dot_dimension_numbers<[1], [0], [0], [1], [0, 0, 1, 1], [], []>} : vector<24x128xbf16>, vector<128x32xbf16>, vector<24x32xf32> -> vector<24x32xf32>
    %c0_67 = arith.constant 0 : index
    %c0_68 = arith.constant 0 : index
    %162 = vector.load %arg14[%c0_67, %c0_68] : memref<1x32xf32, #tpu.memory_space<vmem>>, vector<1x32xf32>
    %163 = vector.broadcast %162 : vector<1x32xf32> to vector<24x32xf32>
    %164 = arith.addf %161, %163 : vector<24x32xf32>
    %c0_69 = arith.constant 0 : index
    %c0_70 = arith.constant 0 : index
    %165 = vector.load %arg15[%c0_69, %c0_70] : memref<1x32xf32, #tpu.memory_space<vmem>>, vector<1x32xf32>
    %166 = vector.broadcast %165 : vector<1x32xf32> to vector<24x32xf32>
    %167 = arith.mulf %164, %166 : vector<24x32xf32>
    %168 = arith.addf %89, %167 : vector<24x32xf32>
    %c0_71 = arith.constant 0 : index
    %c0_72 = arith.constant 0 : index
    %c0_73 = arith.constant 0 : index
    %169 = vector.load %arg16[%c0_71, %c0_72, %c0_73] : memref<1x24x32xf32, #tpu.memory_space<vmem>>, vector<1x24x32xf32>
    %170 = vector.shape_cast %169 : vector<1x24x32xf32> to vector<24x32xf32>
    %171 = vector.shape_cast %168 : vector<24x32xf32> to vector<1x24x32xf32>
    tpu.vector_store %arg16[%c0_71, %c0_72, %c0_73], %171 {strides = array<i32>} : memref<1x24x32xf32, #tpu.memory_space<vmem>>, vector<1x24x32xf32>,
    return
  }
  func.func @transform_0(%arg0: i32) -> (i32, i32, i32) {
    %c0_i32 = arith.constant 0 : i32
    %c0_i32_0 = arith.constant 0 : i32
    %c0_i32_1 = arith.constant 0 : i32
    return %arg0, %c0_i32, %c0_i32_0 : i32, i32, i32
  }
  func.func @transform_1(%arg0: i32) -> (i32, i32) {
    %c0_i32 = arith.constant 0 : i32
    %c0_i32_0 = arith.constant 0 : i32
    %c0_i32_1 = arith.constant 0 : i32
    return %c0_i32, %c0_i32_0 : i32, i32
  }
  func.func @transform_2(%arg0: i32) -> (i32, i32) {
    %c0_i32 = arith.constant 0 : i32
    %c0_i32_0 = arith.constant 0 : i32
    %c0_i32_1 = arith.constant 0 : i32
    return %c0_i32, %c0_i32_0 : i32, i32
  }
  func.func @transform_3(%arg0: i32) -> (i32, i32) {
    %c0_i32 = arith.constant 0 : i32
    %c0_i32_0 = arith.constant 0 : i32
    %c0_i32_1 = arith.constant 0 : i32
    return %c0_i32, %c0_i32_0 : i32, i32
  }
  func.func @transform_4(%arg0: i32) -> (i32, i32) {
    %c0_i32 = arith.constant 0 : i32
    %c0_i32_0 = arith.constant 0 : i32
    %c0_i32_1 = arith.constant 0 : i32
    return %c0_i32, %c0_i32_0 : i32, i32
  }
  func.func @transform_5(%arg0: i32) -> (i32, i32) {
    %c0_i32 = arith.constant 0 : i32
    %c0_i32_0 = arith.constant 0 : i32
    %c0_i32_1 = arith.constant 0 : i32
    return %c0_i32, %c0_i32_0 : i32, i32
  }
  func.func @transform_6(%arg0: i32) -> (i32, i32) {
    %c0_i32 = arith.constant 0 : i32
    %c0_i32_0 = arith.constant 0 : i32
    %c0_i32_1 = arith.constant 0 : i32
    return %c0_i32, %c0_i32_0 : i32, i32
  }
  func.func @transform_7(%arg0: i32) -> (i32, i32) {
    %c0_i32 = arith.constant 0 : i32
    %c0_i32_0 = arith.constant 0 : i32
    %c0_i32_1 = arith.constant 0 : i32
    return %c0_i32, %c0_i32_0 : i32, i32
  }
  func.func @transform_8(%arg0: i32) -> (i32, i32) {
    %c0_i32 = arith.constant 0 : i32
    %c0_i32_0 = arith.constant 0 : i32
    %c0_i32_1 = arith.constant 0 : i32
    return %c0_i32, %c0_i32_0 : i32, i32
  }
  func.func @transform_9(%arg0: i32) -> (i32, i32) {
    %c0_i32 = arith.constant 0 : i32
    %c0_i32_0 = arith.constant 0 : i32
    %c0_i32_1 = arith.constant 0 : i32
    return %c0_i32, %c0_i32_0 : i32, i32
  }
  func.func @transform_10(%arg0: i32) -> (i32, i32) {
    %c0_i32 = arith.constant 0 : i32
    %c0_i32_0 = arith.constant 0 : i32
    %c0_i32_1 = arith.constant 0 : i32
    return %c0_i32, %c0_i32_0 : i32, i32
  }
  func.func @transform_11(%arg0: i32) -> (i32, i32) {
    %c0_i32 = arith.constant 0 : i32
    %c0_i32_0 = arith.constant 0 : i32
    %c0_i32_1 = arith.constant 0 : i32
    return %c0_i32, %c0_i32_0 : i32, i32
  }
  func.func @transform_12(%arg0: i32) -> (i32, i32) {
    %c0_i32 = arith.constant 0 : i32
    %c0_i32_0 = arith.constant 0 : i32
    %c0_i32_1 = arith.constant 0 : i32
    return %c0_i32, %c0_i32_0 : i32, i32
  }
  func.func @transform_13(%arg0: i32) -> (i32, i32) {
    %c0_i32 = arith.constant 0 : i32
    %c0_i32_0 = arith.constant 0 : i32
    %c0_i32_1 = arith.constant 0 : i32
    return %c0_i32, %c0_i32_0 : i32, i32
  }
  func.func @transform_14(%arg0: i32) -> (i32, i32) {
    %c0_i32 = arith.constant 0 : i32
    %c0_i32_0 = arith.constant 0 : i32
    %c0_i32_1 = arith.constant 0 : i32
    return %c0_i32, %c0_i32_0 : i32, i32
  }
  func.func @transform_15(%arg0: i32) -> (i32, i32, i32) {
    %c0_i32 = arith.constant 0 : i32
    %c0_i32_0 = arith.constant 0 : i32
    %c0_i32_1 = arith.constant 0 : i32
    return %arg0, %c0_i32, %c0_i32_0 : i32, i32, i32
  }
}

module attributes {stable_mosaic.version = 11 : i64} {
  func.func @_head_kernel(%arg0: i32, %arg1: memref<1x24x32xf32, #tpu.memory_space<vmem>>, %arg2: memref<1x32xf32, #tpu.memory_space<vmem>>, %arg3: memref<1x32xf32, #tpu.memory_space<vmem>>, %arg4: memref<64x128xf32, #tpu.memory_space<vmem>>, %arg5: memref<1x128xf32, #tpu.memory_space<vmem>>, %arg6: memref<1x1x128xf32, #tpu.memory_space<vmem>>) attributes {dimension_semantics = [#tpu.dimension_semantics<parallel>], iteration_bounds = array<i64: 2>, scalar_prefetch = 0 : i64, scratch_operands = 0 : i64, tpu.core_type = #tpu.core_type<tc>, window_params = [{transform_indices = @transform_0, window_bounds = array<i64: 1, 24, 32>}, {pipeline_mode = #tpu.pipeline_mode<synchronous>, transform_indices = @transform_1, window_bounds = array<i64: 1, 32>}, {pipeline_mode = #tpu.pipeline_mode<synchronous>, transform_indices = @transform_2, window_bounds = array<i64: 1, 32>}, {pipeline_mode = #tpu.pipeline_mode<synchronous>, transform_indices = @transform_3, window_bounds = array<i64: 64, 128>}, {pipeline_mode = #tpu.pipeline_mode<synchronous>, transform_indices = @transform_4, window_bounds = array<i64: 1, 128>}, {transform_indices = @transform_5, window_bounds = array<i64: 1, 1, 128>}]} {
    %c0 = arith.constant 0 : index
    %c0_0 = arith.constant 0 : index
    %c0_1 = arith.constant 0 : index
    %0 = vector.load %arg1[%c0, %c0_0, %c0_1] : memref<1x24x32xf32, #tpu.memory_space<vmem>>, vector<1x24x32xf32>
    %1 = vector.shape_cast %0 : vector<1x24x32xf32> to vector<24x32xf32>
    %c0_2 = arith.constant 0 : index
    %c0_3 = arith.constant 0 : index
    %2 = vector.load %arg2[%c0_2, %c0_3] : memref<1x32xf32, #tpu.memory_space<vmem>>, vector<1x32xf32>
    %c0_4 = arith.constant 0 : index
    %c0_5 = arith.constant 0 : index
    %3 = vector.load %arg3[%c0_4, %c0_5] : memref<1x32xf32, #tpu.memory_space<vmem>>, vector<1x32xf32>
    %cst = arith.constant dense<0.000000e+00> : vector<24xf32>
    %4 = vector.multi_reduction <add>, %1, %cst [1] : vector<24x32xf32> to vector<24xf32>
    %5 = vector.shape_cast %4 : vector<24xf32> to vector<24x1xf32>
    %cst_6 = arith.constant 3.200000e+01 : f32
    %6 = vector.broadcast %cst_6 : f32 to vector<24x1xf32>
    %7 = arith.divf %5, %6 : vector<24x1xf32>
    %8 = vector.broadcast %7 : vector<24x1xf32> to vector<24x32xf32>
    %9 = arith.subf %1, %8 : vector<24x32xf32>
    %10 = arith.mulf %9, %9 : vector<24x32xf32>
    %cst_7 = arith.constant dense<0.000000e+00> : vector<24xf32>
    %11 = vector.multi_reduction <add>, %10, %cst_7 [1] : vector<24x32xf32> to vector<24xf32>
    %12 = vector.shape_cast %11 : vector<24xf32> to vector<24x1xf32>
    %cst_8 = arith.constant 3.200000e+01 : f32
    %13 = vector.broadcast %cst_8 : f32 to vector<24x1xf32>
    %14 = arith.divf %12, %13 : vector<24x1xf32>
    %cst_9 = arith.constant 9.99999997E-7 : f32
    %15 = vector.broadcast %cst_9 : f32 to vector<24x1xf32>
    %16 = arith.addf %14, %15 : vector<24x1xf32>
    %17 = math.rsqrt %16 : vector<24x1xf32>
    %18 = vector.broadcast %17 : vector<24x1xf32> to vector<24x32xf32>
    %19 = arith.mulf %9, %18 : vector<24x32xf32>
    %20 = vector.broadcast %2 : vector<1x32xf32> to vector<24x32xf32>
    %21 = arith.mulf %19, %20 : vector<24x32xf32>
    %22 = vector.broadcast %3 : vector<1x32xf32> to vector<24x32xf32>
    %23 = arith.addf %21, %22 : vector<24x32xf32>
    %24 = vector.extract_strided_slice %23 {offsets = [0, 0], sizes = [1, 32], strides = [1, 1]} : vector<24x32xf32> to vector<1x32xf32>
    %25 = tpu.iota {dimensions = array<i32: 0>} : vector<24x1xi32>
    %c1_i32 = arith.constant 1 : i32
    %26 = vector.broadcast %c1_i32 : i32 to vector<24x1xi32>
    %27 = arith.cmpi sge, %25, %26 : vector<24x1xi32>
    %c17_i32 = arith.constant 17 : i32
    %28 = vector.broadcast %c17_i32 : i32 to vector<24x1xi32>
    %29 = arith.cmpi slt, %25, %28 : vector<24x1xi32>
    %30 = arith.andi %27, %29 : vector<24x1xi1>
    %31 = arith.extui %30 : vector<24x1xi1> to vector<24x1xi32>
    %32 = arith.sitofp %31 : vector<24x1xi32> to vector<24x1xf32>
    %33 = vector.broadcast %32 : vector<24x1xf32> to vector<24x32xf32>
    %34 = arith.mulf %23, %33 : vector<24x32xf32>
    %cst_10 = arith.constant dense<0.000000e+00> : vector<32xf32>
    %35 = vector.multi_reduction <add>, %34, %cst_10 [0] : vector<24x32xf32> to vector<32xf32>
    %36 = vector.shape_cast %35 : vector<32xf32> to vector<1x32xf32>
    %cst_11 = arith.constant 1.600000e+01 : f32
    %37 = vector.broadcast %cst_11 : f32 to vector<1x32xf32>
    %38 = arith.divf %36, %37 : vector<1x32xf32>
    %39 = tpu.concatenate %24, %38 in 1 : vector<1x32xf32>, vector<1x32xf32> -> vector<1x64xf32>
    %c0_12 = arith.constant 0 : index
    %c0_13 = arith.constant 0 : index
    %40 = vector.load %arg4[%c0_12, %c0_13] : memref<64x128xf32, #tpu.memory_space<vmem>>, vector<64x128xf32>
    %cst_14 = arith.constant dense<0.000000e+00> : vector<1x128xf32>
    %41 = tpu.matmul %39, %40, %cst_14 {dimension_numbers = #tpu.dot_dimension_numbers<[1], [0], [0], [1], [0, 0, 1, 1], [], []>} : vector<1x64xf32>, vector<64x128xf32>, vector<1x128xf32> -> vector<1x128xf32>
    %c0_15 = arith.constant 0 : index
    %c0_16 = arith.constant 0 : index
    %42 = vector.load %arg5[%c0_15, %c0_16] : memref<1x128xf32, #tpu.memory_space<vmem>>, vector<1x128xf32>
    %43 = arith.addf %41, %42 : vector<1x128xf32>
    %c0_17 = arith.constant 0 : index
    %c0_18 = arith.constant 0 : index
    %c0_19 = arith.constant 0 : index
    %44 = vector.load %arg6[%c0_17, %c0_18, %c0_19] : memref<1x1x128xf32, #tpu.memory_space<vmem>>, vector<1x1x128xf32>
    %45 = vector.shape_cast %44 : vector<1x1x128xf32> to vector<1x128xf32>
    %46 = vector.shape_cast %43 : vector<1x128xf32> to vector<1x1x128xf32>
    tpu.vector_store %arg6[%c0_17, %c0_18, %c0_19], %46 {strides = array<i32>} : memref<1x1x128xf32, #tpu.memory_space<vmem>>, vector<1x1x128xf32>,
    return
  }
  func.func @transform_0(%arg0: i32) -> (i32, i32, i32) {
    %c0_i32 = arith.constant 0 : i32
    %c0_i32_0 = arith.constant 0 : i32
    %c0_i32_1 = arith.constant 0 : i32
    return %arg0, %c0_i32, %c0_i32_0 : i32, i32, i32
  }
  func.func @transform_1(%arg0: i32) -> (i32, i32) {
    %c0_i32 = arith.constant 0 : i32
    %c0_i32_0 = arith.constant 0 : i32
    %c0_i32_1 = arith.constant 0 : i32
    return %c0_i32, %c0_i32_0 : i32, i32
  }
  func.func @transform_2(%arg0: i32) -> (i32, i32) {
    %c0_i32 = arith.constant 0 : i32
    %c0_i32_0 = arith.constant 0 : i32
    %c0_i32_1 = arith.constant 0 : i32
    return %c0_i32, %c0_i32_0 : i32, i32
  }
  func.func @transform_3(%arg0: i32) -> (i32, i32) {
    %c0_i32 = arith.constant 0 : i32
    %c0_i32_0 = arith.constant 0 : i32
    %c0_i32_1 = arith.constant 0 : i32
    return %c0_i32, %c0_i32_0 : i32, i32
  }
  func.func @transform_4(%arg0: i32) -> (i32, i32) {
    %c0_i32 = arith.constant 0 : i32
    %c0_i32_0 = arith.constant 0 : i32
    %c0_i32_1 = arith.constant 0 : i32
    return %c0_i32, %c0_i32_0 : i32, i32
  }
  func.func @transform_5(%arg0: i32) -> (i32, i32, i32) {
    %c0_i32 = arith.constant 0 : i32
    %c0_i32_0 = arith.constant 0 : i32
    %c0_i32_1 = arith.constant 0 : i32
    return %arg0, %c0_i32, %c0_i32_0 : i32, i32, i32
  }
}

</mosaic_0001>

<bundles_post_ra>
// kernel: dino_forward.4
= control target key start
LH: loop header
LB: loop body
LE: loop exit
PB: predicated region body
PF: predicated region fallthrough
CT: control target
= control target key end

     0   :  { %s420_s15 = smov 0   ;;  %s455_s0 = inlined_call_operand.vmem [shape: f32[2,16,48], index: 0, kind: input, shape index: {}]   ;;  %s456_s1 = inlined_call_operand.vmem [shape: bf16[48,32], index: 1, kind: input, shape index: {}]   ;;  %s457_s2 = inlined_call_operand.vmem [shape: f32[1,32], index: 2, kind: input, shape index: {}]   ;;  %s458_s3 = inlined_call_operand.vmem [shape: f32[16,32], index: 3, kind: input, shape index: {}]   ;;  %s459_s4 = inlined_call_operand.vmem [shape: f32[2,16,32], index: 4, kind: output, shape index: {}]  }
   0x1 LB: > { %s340_s16 = sadd.s32 4294967295, %s391_s15   ;;  %p344_p0 = scmp.ge.s32.totalorder %s391_s15, 1  ;;  %s391_s15 = sphi %s420_s15, %s14_s15  }
   0x2   : > { %p162_p1 = scmp.lt.s32.totalorder %s391_s15, 3 }
   0x4   : > { %p163_p2 = pnand %p344_p0, %p162_p1 }
   0x5   : > { %v382_v0 = vld [vmem:[%s456_s1] sm:$0xff] (!%p163_p2)   ;;  %v393_v1 = vmov (!%p163_p2), 0.0   ;;  %v383_v2 = vld [vmem:[%s456_s1 + $0x8] sm:$0xff] (!%p163_p2)   ;;  %vm394_vm0 = vmmov (!%p163_p2), 0   ;;  %p188_p3 = scmp.lt.s32.totalorder (!%p163_p2), %s340_s16, 1  ;;  %v384_v3 = vld [vmem:[%s456_s1 + $0x10] sm:$0xff] (!%p163_p2)  }
   0x6   : > { %166 = sbr.rel (%p163_p2) target bundleno = 238 (0xee), region = 36  ;;  %362 = vmatprep.subr.bf16.mxu0 (!%p163_p2), %v393_v1  ;;  %368 = vmatprep.mubr.msk.bf16.mxu0 (!%p163_p2), %vm394_vm0, %v393_v1  ;;  %vm233_vm1 = vcmask (!%p163_p2), 392192   ;;  %v349_v7 = vld [vmem:[%s457_s2] ss:$0 sm:$0xff] (!%p163_p2)  ;;  %vm282_vm2 = vcmask (!%p163_p2), 261120   ;;  %v279_v13 = vld [vmem:[%s458_s3 + $0x8] sm:$0xff] (!%p163_p2) }
   0x7   : > { %363 = vmatpush3.bf16.msra.mxu0 (!%p163_p2), %v382_v0  ;;  %v278_v9 = vld [vmem:[%s458_s3] sm:$0xff] (!%p163_p2) }
   0x8   : > { %364 = vmatprep.subr.bf16.mxu0 (!%p163_p2), %v393_v1 }
   0xb   : > { %365 = vmatpush3.bf16.msra.mxu0 (!%p163_p2), %v383_v2 }
   0xc   : > { %366 = vmatprep.subr.bf16.mxu0 (!%p163_p2), %v393_v1 }
   0xd   : > { %s461_s16 = smov (!%p188_p3, %s340_s16), 1 }
   0xe   : > { %s356_s23 = sshll.u32 %s461_s16, 4 }
   0xf   : > { %s192_s26 = scalar_lea.vmem %s455_s0, %s356_s23  ;;  %367 = vmatpush3.bf16.msra.mxu0 %v384_v3  ;;  %s197_s7 = scalar_lea.vmem %s459_s4, %s356_s23 }
  0x10   : > { %v199_v4 = vld [vmem:[%s192_s26] sm:$0xff]  ;;  %v200_v5 = vld [vmem:[%s192_s26 + $0x8] sm:$0xff] }
  0x11   : > { %v201_v6 = vpack.c.bf16 %v200_v5, %v199_v4 }
  0x13   : > { %369 = vmatmul.mubr.msk.bf16.vlgmr.msra.gmra.mrb[0].mxu0 %vm233_vm1, %v201_v6 }
  0xe6   : > { %v271_v8 = vpop.f32.mrb[0].mxu0 }
  0xe7   : > { %v272_v10 = vadd.f32 %v349_v7, %v271_v8  ;;  %v370_v11 = vpop.f32.mrb[1].mxu0 }
  0xe8   : > { %v274_v12 = vpop.f32.mrb[2].mxu0 }
  0xe9   : > { %v280_v14 = vadd.f32 %v278_v9, %v272_v10  ;;  %v275_v15 = vadd.f32 %v349_v7, %v274_v12  ;;  %v371_v16 = vpop.f32.mrb[3].mxu0 }
  0xeb   : > { %283 = vst.msk [vmem:[%s197_s7] sm:$0xff] %vm282_vm2, %v280_v14  ;;  %v281_v17 = vadd.f32 %v279_v13, %v275_v15 }
  0xed   : > { %284 = vst.msk [vmem:[%s197_s7 + $0x8] sm:$0xff] %vm282_vm2, %v281_v17 }
  0xee PF: > { %s14_s15 = sadd.s32 1, %s391_s15  }
  0xef   : > { %p11_p4 = scmp.ge.s32.totalorder %s14_s15, 4  }
  0xf1   :  { %13 = sbr.rel (!%p11_p4) target bundleno = 1 (0x1), region = 66 }

// kernel: dino_forward.7
= control target key start
LH: loop header
LB: loop body
LE: loop exit
PB: predicated region body
PF: predicated region fallthrough
CT: control target
= control target key end

     0   :  { %10 = vsyncpa [#allocation3], 0  ;;  %s823_s0 = inlined_call_operand.vmem [shape: f32[2,24,32], index: 0, kind: input, shape index: {}]   ;;  %s824_s1 = inlined_call_operand.vmem [shape: f32[1,32], index: 1, kind: input, shape index: {}]   ;;  %s825_s2 = inlined_call_operand.vmem [shape: f32[1,32], index: 2, kind: input, shape index: {}]   ;;  %s826_s3 = inlined_call_operand.vmem [shape: f32[64,128], index: 3, kind: input, shape index: {}]   ;;  %s827_s4 = inlined_call_operand.vmem [shape: f32[1,128], index: 4, kind: input, shape index: {}]   ;;  %s828_s5 = inlined_call_operand.hbm [shape: f32[2,1,128], index: 5, kind: output, shape index: {}]  }
   0x1   :  { %12 = vsyncpa [#allocation3 + $0x1], 0  ;;  %s680_s18 = smov 0   ;;  %s682_s19 = smov 0  }
   0x2   :  { %s684_s20 = smov 0   ;;  %s686_s21 = smov 0  }
   0x3 LB: > { %s701_s22 = sadd.s32 4294967295, %s643_s21   ;;  %s478_s23 = sadd.s32 4294967294, %s643_s21   ;;  %s643_s21 = sphi %s686_s21, %s834_s21   ;;  %s639_s20 = sphi %s684_s20, %s833_s20   ;;  %s635_s19 = sphi %s682_s19, %s832_s19   ;;  %s631_s18 = sphi %s680_s18, %s831_s18  }
   0x4   : > { %s705_s24 = sadd.s32 1, %s643_s21   ;;  %s135_s25 = sadd.s32 1, %s639_s20 }
   0x5   : > { %s132_s26 = ssub.s32 %s643_s21, %s705_s24  ;;  %p145_p0 = scmp.ne.s32.totalorder %s639_s20, %s635_s19 }
   0x6   : > { %p133_p1 = scmp.eq.s32.totalorder %s132_s26, 0  ;;  %p146_p2 = scmp.eq.s32.totalorder %s701_s22, 1 }
   0x7   : > { %p151_p3 = scmp.ne.s32.totalorder %s635_s19, %s631_s18  ;;  %p152_p4 = scmp.eq.s32.totalorder %s478_s23, 1 }
   0x8   : > { %s716_s27 = scalar_select %p133_p1, %s639_s20, %s135_s25  }
   0x9   : > { %p718_p5 = por %p146_p2, %p145_p0  ;;  %p722_p6 = por %p152_p4, %p151_p3 }
   0xa   : > { %p481_p7 = scmp.ge.s32.totalorder %s643_s21, 1  ;;  %p190_p8 = scmp.lt.s32.totalorder %s643_s21, 3 }
   0xc   : > { %p191_p9 = pnand %p481_p7, %p190_p8 }
   0xd   : > { %p217_p10 = scmp.lt.s32.totalorder (!%p191_p9), %s701_s22, 1  ;;  %vm227_vm0 = vcmask (!%p191_p9), 261120   ;;  %v326_v21 = vld [vmem:[%s826_s3] sm:$0xff] (!%p191_p9)  ;;  %v327_v22 = vld [vmem:[%s826_s3 + $0x8] sm:$0xff] (!%p191_p9)  ;;  %v328_v23 = vld [vmem:[%s826_s3 + $0x10] sm:$0xff] (!%p191_p9)  ;;  %v645_v24 = vmov (!%p191_p9), 0.0|0.0   ;;  %v286_v43 = vlaneseq (!%p191_p9) }
   0xe   : > { %194 = sbr.rel (%p191_p9) target bundleno = 708 (0x2c4), region = 40  ;;  %519 = vmatprep.subr.bf16.mxu0 (!%p191_p9), %v645_v24  ;;  %v520_v25 = vpack.c.bf16 (!%p191_p9), %v327_v22, %v326_v21  ;;  %v329_v26 = vld [vmem:[%s826_s3 + $0x18] sm:$0xff] (!%p191_p9)  ;;  %v330_v28 = vld [vmem:[%s826_s3 + $0x20] sm:$0xff] (!%p191_p9)  ;;  %v331_v29 = vld [vmem:[%s826_s3 + $0x28] sm:$0xff] (!%p191_p9)  ;;  %v646_v55 = vmov (!%p191_p9), 0.0   ;;  %vm647_vm3 = vmmov (!%p191_p9), 0  }
   0xf   : > { %v523_v27 = vpack.c.bf16 (!%p191_p9), %v329_v26, %v328_v23  ;;  %v526_v30 = vpack.c.bf16 (!%p191_p9), %v331_v29, %v330_v28  ;;  %v332_v31 = vld [vmem:[%s826_s3 + $0x30] sm:$0xff] (!%p191_p9)  ;;  %v333_v32 = vld [vmem:[%s826_s3 + $0x38] sm:$0xff] (!%p191_p9)  ;;  %v287_v44 = vshrl.u32 (!%p191_p9), %v286_v43, 7  ;;  %v483_v46 = vld [vmem:[%s824_s1] ss:$0 sm:$0xff] (!%p191_p9)  ;;  %516 = vmatprep.mubr.msk.f32.mxu0 (!%p191_p9), %vm647_vm3, %v646_v55  ;;  %s648_s14 = smov (!%p191_p9), 32  }
  0x10   : > { %521 = vmatpush3.bf16.msra.mxu0 (!%p191_p9), %v520_v25  ;;  %v529_v33 = vpack.c.bf16 (!%p191_p9), %v333_v32, %v332_v31  ;;  %v484_v49 = vld [vmem:[%s825_s2] ss:$0 sm:$0xff] (!%p191_p9)  ;;  %vm335_vm4 = vcmask (!%p191_p9), 523264   ;;  %s215_s15 = sand.u32 (!%p191_p9), 1, %s635_s19   ;;  %s488_s23 = sshll.u32 (!%p191_p9), %s701_s22, 4 }
  0x11   : > { %522 = vmatprep.subr.bf16.mxu0 (!%p191_p9), %v645_v24  ;;  %v289_v48 = vadd.s32 (!%p191_p9), 16, %v287_v44  ;;  %vm290_vm1 = vcmp.ge.s32.totalorder (!%p191_p9), %v287_v44, 1  ;;  %s216_s25 = scalar_lea.vmem (!%p191_p9), [#allocation2], %s215_s15  ;;  %s781_s7 = scalar_lea.hbm (!%p191_p9), %s828_s5, %s488_s23 }
  0x12   : > { %v485_v56 = vsel (!%p191_p9), %vm290_vm1, 1.0, %v646_v55  ;;  %s423_s26 = sshll.u32 (!%p191_p9), %s216_s25, 4  ;;  %s411_s8 = scalar_lea.sflag (!%p191_p9), [#allocation3], %s215_s15  ;;  %s783_s26 = int_to_ptr.vmem [resolvable:$true] %s423_s26 }
  0x13   : > { %vm295_vm2 = vcmp.lt.s32.totalorder (!%p191_p9), %v289_v48, 17 }
  0x14   : > { %524 = vmatpush3.bf16.msra.mxu0 (!%p191_p9), %v523_v27  ;;  %v486_v60 = vsel (!%p191_p9), %vm295_vm2, 1.0, %v646_v55 }
  0x15   : > { %s218_s30 = scalar_select %p217_p10, %s701_s22, 1  ;;  %525 = vmatprep.subr.bf16.mxu0 %v645_v24 }
  0x16   : > { %s649_s22 = smov [#allocation2]  }
  0x17   : > { %s531_s6 = smul.u32 24, %s218_s30  ;;  %s585_s10 = sshll.u32 %s649_s22, 4  ;;  %s586_s10 = int_to_ptr.vmem [resolvable:$false] %s585_s10 }
  0x18   : > { %527 = vmatpush3.bf16.msra.mxu0 %v526_v30  ;;  %s587_s11 = scalar_lea.vmem %s586_s10, 32  ;;  %p588_p0 = scmp.lt.s32.totalorder %s783_s26, %s586_s10 }
  0x19   : > { %s221_s9 = scalar_lea.vmem %s823_s0, %s531_s6  ;;  %528 = vmatprep.subr.bf16.mxu0 %v645_v24 }
  0x1a   : > { %v222_v0 = vld [vmem:[%s221_s9] sm:$0xff]  ;;  %v224_v1 = vld [vmem:[%s221_s9 + $0x10] sm:$0xff]  ;;  %v223_v2 = vld [vmem:[%s221_s9 + $0x8] sm:$0xff]  ;;  %s581_s9 = scalar_lea.vmem %s783_s26, 16 }
  0x1b   : > { %v228_v3 = vsel %vm227_vm0, %v222_v0, 0.0  ;;  %v234_v4 = vsel %vm227_vm0, %v224_v1, 0.0  ;;  %v231_v5 = vsel %vm227_vm0, %v223_v2, 0.0  ;;  %p582_p11 = scmp.ne.s32.totalorder %s783_s26, %s581_s9  ;;  %p589_p1 = scmp.lt.s32.totalorder %s587_s11, %s581_s9 }
  0x1c   : > { %229 = vadd.xlane.f32.xlu0 %v228_v3  ;;  %235 = vadd.xlane.f32.xlu1 %v234_v4 }
  0x1d   : > { %530 = vmatpush3.bf16.msra.mxu0 %v529_v33  ;;  %p583_p12 = pnand %p582_p11, %p718_p5  ;;  %p590_p2 = por %p589_p1, %p588_p0 }
  0x1f   : > { %p584_p13 = pneg %p583_p12 }
  0x20   : > { %232 = vadd.xlane.f32.xlu0 %v231_v5 }
  0x21   : > { %p591_p3 = pnand %p590_p2, %p584_p13 }
  0xa9   : > { %v230_v6 = vpop.xlane.xlu0 %229  ;;  %v236_v7 = vpop.xlane.xlu1 %235 }
  0xaa   : > { %v238_v8 = vmul.f32 0.03125, %v230_v6  ;;  %v240_v9 = vmul.f32 0.03125, %v236_v7 }
  0xac   : > { %v241_v10 = vsub.f32 %v222_v0, %v238_v8  ;;  %v243_v11 = vsub.f32 %v224_v1, %v240_v9 }
  0xad   : > { %v233_v12 = vpop.xlane.xlu0 %232 }
  0xae   : > { %v239_v13 = vmul.f32 0.03125, %v233_v12  ;;  %v244_v14 = vmul.f32 %v241_v10, %v241_v10  ;;  %v246_v15 = vmul.f32 %v243_v11, %v243_v11 }
  0xb0   : > { %v242_v16 = vsub.f32 %v223_v2, %v239_v13  ;;  %v247_v17 = vsel %vm227_vm0, %v244_v14, 0.0  ;;  %v253_v18 = vsel %vm227_vm0, %v246_v15, 0.0  ;;  %v334_v15 = vld [vmem:[%s827_s4] sm:$0x1] }
  0xb1   : > { %248 = vadd.xlane.f32.xlu1 %v247_v17 }
  0xb2   : > { %v245_v19 = vmul.f32 %v242_v16, %v242_v16 }
  0xb4   : > { %v250_v20 = vsel %vm227_vm0, %v245_v19, 0.0 }
  0xb5   : > { %254 = vadd.xlane.f32.xlu1 %v253_v18  ;;  %251 = vadd.xlane.f32.xlu0 %v250_v20 }
 0x13e   : > { %v249_v34 = vpop.xlane.xlu1 %248 }
 0x13f   : > { %v256_v35 = vmul.f32 0.03125, %v249_v34 }
 0x141   : > { %v259_v36 = vadd.f32 1e-06, %v256_v35 }
 0x142   : > { %v255_v37 = vpop.xlane.xlu1 %254  ;;  %v252_v38 = vpop.xlane.xlu0 %251 }
 0x143   : > { %575 = vrsqrt.f32 %v259_v36  ;;  %v258_v39 = vmul.f32 0.03125, %v255_v37  ;;  %v257_v40 = vmul.f32 0.03125, %v252_v38 }
 0x145   : > { %v261_v41 = vadd.f32 1e-06, %v258_v39  ;;  %v260_v42 = vadd.f32 1e-06, %v257_v40 }
 0x147   : > { %577 = vrsqrt.f32 %v261_v41 }
 0x148   : > { %579 = vrsqrt.f32 %v260_v42 }
 0x14d   : > { %v576_v45 = vpop.eup %575 }
 0x14e   : > { %v265_v47 = vmul.f32 %v576_v45, %v241_v10 }
 0x150   : > { %v274_v50 = vmul.f32 %v483_v46, %v265_v47 }
 0x151   : > { %v578_v51 = vpop.eup %577 }
 0x152   : > { %v580_v52 = vpop.eup %579  ;;  %v283_v53 = vadd.f32 %v484_v49, %v274_v50  ;;  %v267_v54 = vmul.f32 %v578_v51, %v243_v11 }
 0x153   : > { %v266_v57 = vmul.f32 %v580_v52, %v242_v16 }
 0x154   : > { %v276_v58 = vmul.f32 %v483_v46, %v267_v54  ;;  %v305_v61 = vmul.f32 %v485_v56, %v283_v53 }
 0x155   : > { %v275_v59 = vmul.f32 %v483_v46, %v266_v57 }
 0x156   : > { %v285_v62 = vadd.f32 %v484_v49, %v276_v58  ;;  %v308_v1 = vsel %vm227_vm0, %v305_v61, 0.0 }
 0x157   : > { %v284_v63 = vadd.f32 %v484_v49, %v275_v59 }
 0x158   : > { %v307_v0 = vmul.f32 %v486_v60, %v285_v62 }
 0x159   : > { %v309_v2 = vsel %vm227_vm0, %v284_v63, 0.0 }
 0x15a   : > { %v310_v3 = vadd.f32 %v309_v2, %v308_v1  ;;  %v311_v4 = vsel %vm227_vm0, %v307_v0, 0.0 }
 0x15c   : > { %v312_v5 = vadd.f32 %v311_v4, %v310_v3 }
 0x15e   : > { %v313_v6 = vrot.slane %v312_v5, 4 }
 0x160   : > { %v314_v7 = vadd.f32 %v313_v6, %v312_v5 }
 0x162   : > { %v315_v8 = vrot.slane %v314_v7, 2 }
 0x164   : > { %v316_v9 = vadd.f32 %v315_v8, %v314_v7 }
 0x166   : > { %v317_v10 = vrot.slane %v316_v9, 1 }
 0x168   : > { %v318_v11 = vadd.f32 %v317_v10, %v316_v9 }
 0x16a   : > { %v320_v12 = vmul.f32 0.0625, %v318_v11 }
 0x16c   : > { %322 = vrot.lane.b32.xlu0 %v320_v12, %s648_s14 }
 0x1de   : > { %v323_v13 = vpop.permute.xlu0 %322 }
 0x1df   : > { %v325_v14 = vsel %vm227_vm0, %v283_v53, %v323_v13 }
 0x1e0   : > { %517 = vmatmul.mubr.msk.f32.vlgmr.msra.gmra.mrb[0].mxu0 %vm335_vm4, %v325_v14 }
 0x2b3   : > { %v405_v16 = vpop.f32.mrb[0].mxu0 }
 0x2b4   : > { %v406_v17 = vadd.f32 %v405_v16, %v334_v15  ;;  %v518_v18 = vpop.f32.mrb[1].mxu0 }
 0x2b6   : > { %409 = vst [vmem:[%s216_s25] sm:$0x1] %v406_v17 }
 0x2b7   : > { %594 = shalt.err (!%p591_p3)
}
 0x2b8   : > { %s595_s12 = scalar_lea.hbm %s781_s7, 16  ;;  %s599_s15 = scalar_lea.hbm %s828_s5, 32 }
 0x2b9   : > { %p596_p4 = scmp.ne.s32.totalorder %s781_s7, %s595_s12  ;;  %p600_p9 = scmp.lt.u32.totalorder %s781_s7, %s828_s5 }
 0x2ba   : > { %p601_p10 = scmp.lt.u32.totalorder %s599_s15, %s595_s12  ;;  %p603_p12 = scmp.lt.u32.totalorder %s595_s12, %s781_s7 }
 0x2bb   : > { %p597_p7 = pnand %p596_p4, %p718_p5 }
 0x2bc   : > { %p602_p11 = por %p601_p10, %p600_p9 }
 0x2bd   : > { %p598_p8 = pneg %p597_p7 }
 0x2be   : > { %p604_p13 = por %p603_p12, %p602_p11 }
 0x2c0   : > { %p605_p0 = pnand %p604_p13, %p598_p8 }
 0x2c2   : > { %608 = shalt.err (!%p605_p0)
}
 0x2c3   : > { %532 = dma.vmem_to_hbm [thread:$0]  (%p718_p5), %s783_s26, 16, %s781_s7, %s411_s8  }
 0x2c4 PF: > { %p538_p1 = scmp.ge.s32.totalorder %s643_s21, 2  ;;  %s435_s23 = sand.u32 1, %s631_s18  }
 0x2c5   : > { %s436_s25 = scalar_lea.sflag [#allocation3], %s435_s23 }
 0x2c6   : > { %p535_p2 = pnand %p538_p1, %p722_p6 }
 0x2c8   : > { %626 = dma.done.wait (!%p535_p2), %s436_s25, 16  }
 0x2c9   : > { %628 = vsyncadd (!%p535_p2), %s436_s25, 4294967280  ;;  %p15_p3 = scmp.ge.s32.totalorder %s705_s24, 4   ;;  %s831_s18 = smov %s635_s19 }
 0x2ca   : > { %s832_s19 = smov %s639_s20  ;;  %s833_s20 = smov %s716_s27 }
 0x2cb   : > { %s834_s21 = smov %s705_s24  ;;  %17 = sbr.rel (!%p15_p3) target bundleno = 3 (0x3), region = 75 }
 0x2d2   :  { %440 = vsyncpa [#allocation3], 1 }
 0x2d3   :  { %442 = vsyncpa [#allocation3 + $0x1], 1 }

// kernel: dino_forward.5
= control target key start
LH: loop header
LB: loop body
LE: loop exit
PB: predicated region body
PF: predicated region fallthrough
CT: control target
= control target key end

     0   :  { %s1851_s18 = smov 0   ;;  %s2093_s0 = inlined_call_operand.vmem [shape: f32[2,24,32], index: 0, kind: input, shape index: {}]   ;;  %s2094_s1 = inlined_call_operand.vmem [shape: f32[1,32], index: 1, kind: input, shape index: {}]   ;;  %s2095_s2 = inlined_call_operand.vmem [shape: f32[1,32], index: 2, kind: input, shape index: {}]   ;;  %s2096_s3 = inlined_call_operand.vmem [shape: bf16[32,96], index: 3, kind: input, shape index: {}]   ;;  %s2097_s4 = inlined_call_operand.vmem [shape: f32[1,96], index: 4, kind: input, shape index: {}]   ;;  %s2098_s5 = inlined_call_operand.vmem [shape: bf16[32,32], index: 5, kind: input, shape index: {}]   ;;  %s2099_s6 = inlined_call_operand.vmem [shape: f32[1,32], index: 6, kind: input, shape index: {}]   ;;  %s2100_s7 = inlined_call_operand.vmem [shape: f32[1,32], index: 7, kind: input, shape index: {}]   ;;  %s2101_s8 = inlined_call_operand.vmem [shape: f32[1,32], index: 8, kind: input, shape index: {}]   ;;  %s2102_s9 = inlined_call_operand.vmem [shape: f32[1,32], index: 9, kind: input, shape index: {}]   ;;  %s2103_s10 = inlined_call_operand.vmem [shape: bf16[32,128], index: 10, kind: input, shape index: {}]   ;;  %s2104_s11 = inlined_call_operand.vmem [shape: f32[1,128], index: 11, kind: input, shape index: {}]   ;;  %s2105_s12 = inlined_call_operand.vmem [shape: bf16[128,32], index: 12, kind: input, shape index: {}]   ;;  %s2106_s13 = inlined_call_operand.vmem [shape: f32[1,32], index: 13, kind: input, shape index: {}]   ;;  %s2107_s14 = inlined_call_operand.vmem [shape: f32[1,32], index: 14, kind: input, shape index: {}]   ;;  %s2108_s15 = inlined_call_operand.vmem [shape: f32[2,24,32], index: 15, kind: output, shape index: {}]  }
   0x1 LB: > { %s1506_s19 = sadd.s32 4294967295, %s1762_s18   ;;  %p1510_p0 = scmp.ge.s32.totalorder %s1762_s18, 1  ;;  %s1762_s18 = sphi %s1851_s18, %s25_s18  }
   0x2   : > { %p437_p1 = scmp.lt.s32.totalorder %s1762_s18, 3 }
   0x4   : > { %p438_p2 = pnand %p1510_p0, %p437_p1 }
   0x5   : > { %p485_p3 = scmp.lt.s32.totalorder (!%p438_p2), %s1506_s19, 1  ;;  %vm501_vm0 = vcmask (!%p438_p2), 261120   ;;  %v1694_v21 = vld [vmem:[%s2096_s3] sm:$0xff] (!%p438_p2)   ;;  %v1695_v22 = vld [vmem:[%s2096_s3 + $0x8] sm:$0xff] (!%p438_p2)   ;;  %s1764_s22 = smov (!%p438_p2), 96   ;;  %vm655_vm1 = vcmask (!%p438_p2), 130048  }
   0x6   : > { %441 = sbr.rel (%p438_p2) target bundleno = 3149 (0xc4d), region = 80  ;;  %1591 = vmatprep.subr.bf16.mxu0 (!%p438_p2), %v1694_v21  ;;  %v1513_v34 = vld [vmem:[%s2094_s1] ss:$0 sm:$0xff] (!%p438_p2)  ;;  %vm719_vm3 = vcmask (!%p438_p2), 195584   ;;  %s1766_s24 = smov (!%p438_p2), 112   ;;  %vm766_vm4 = vcmask (!%p438_p2), 1043456  }
   0x7   : > { %1592 = vmatpush3.bf16.msra.mxu0 (!%p438_p2), %v1694_v21  ;;  %v1514_v40 = vld [vmem:[%s2095_s2] ss:$0 sm:$0xff] (!%p438_p2)  ;;  %s1767_s25 = smov (!%p438_p2), 80   ;;  %s1768_s26 = smov (!%p438_p2), 48  }
   0x8   : > { %1593 = vmatprep.subr.bf16.mxu0 (!%p438_p2), %v1695_v22  ;;  %v1515_v48 = vld [vmem:[%s2097_s4] ss:$0 sm:$0xff] (!%p438_p2)  ;;  %s1769_s16 = smov (!%p438_p2), 16  }
   0xb   : > { %1594 = vmatpush3.bf16.msra.mxu0 (!%p438_p2), %v1695_v22 }
   0xd   : > { %s2110_s19 = smov (!%p485_p3, %s1506_s19), 1 }
   0xe   : > { %s1673_s20 = smul.u32 24, %s2110_s19 }
  0x10   : > { %s489_s23 = scalar_lea.vmem %s2093_s0, %s1673_s20  ;;  %s494_s17 = scalar_lea.vmem %s2108_s15, %s1673_s20 }
  0x11   : > { %v1867_v0 = vld [vmem:[%s489_s23] sm:$0xff]  ;;  %v1869_v1 = vld [vmem:[%s489_s23 + $0x10] sm:$0xff]  ;;  %v1871_v2 = vld [vmem:[%s489_s23 + $0x8] sm:$0xff]  ;;  %s1765_s23 = smov 64  }
  0x12   : > { %v502_v3 = vsel %vm501_vm0, %v1867_v0, 0.0  ;;  %v508_v4 = vsel %vm501_vm0, %v1869_v1, 0.0  ;;  %v505_v5 = vsel %vm501_vm0, %v1871_v2, 0.0 }
  0x13   : > { %503 = vadd.xlane.f32.xlu0 %v502_v3  ;;  %509 = vadd.xlane.f32.xlu1 %v508_v4 }
  0x17   : > { %506 = vadd.xlane.f32.xlu0 %v505_v5 }
  0xa0   : > { %v504_v6 = vpop.xlane.xlu0 %503  ;;  %v510_v7 = vpop.xlane.xlu1 %509 }
  0xa1   : > { %v512_v8 = vmul.f32 0.03125, %v504_v6  ;;  %v514_v9 = vmul.f32 0.03125, %v510_v7  ;;  %v639_v6 = vlaneseq }
  0xa3   : > { %v515_v10 = vsub.f32 %v1867_v0, %v512_v8  ;;  %v517_v11 = vsub.f32 %v1869_v1, %v514_v9  ;;  %v1914_v7 = vand.u32 127, %v639_v6 }
  0xa4   : > { %v507_v12 = vpop.xlane.xlu0 %506 }
  0xa5   : > { %v513_v13 = vmul.f32 0.03125, %v507_v12  ;;  %v518_v14 = vmul.f32 %v515_v10, %v515_v10  ;;  %v520_v15 = vmul.f32 %v517_v11, %v517_v11  ;;  %vm641_vm2 = vcmp.lt.s32.totalorder %v1914_v7, 17 }
  0xa7   : > { %v516_v16 = vsub.f32 %v1871_v2, %v513_v13  ;;  %v521_v17 = vsel %vm501_vm0, %v518_v14, 0.0  ;;  %v527_v18 = vsel %vm501_vm0, %v520_v15, 0.0 }
  0xa8   : > { %522 = vadd.xlane.f32.xlu1 %v521_v17 }
  0xa9   : > { %v519_v19 = vmul.f32 %v516_v16, %v516_v16 }
  0xab   : > { %v524_v20 = vsel %vm501_vm0, %v519_v19, 0.0 }
  0xac   : > { %528 = vadd.xlane.f32.xlu1 %v527_v18  ;;  %525 = vadd.xlane.f32.xlu0 %v524_v20 }
 0x135   : > { %v523_v23 = vpop.xlane.xlu1 %522 }
 0x136   : > { %v530_v24 = vmul.f32 0.03125, %v523_v23 }
 0x138   : > { %v533_v25 = vadd.f32 1e-06, %v530_v24 }
 0x139   : > { %v529_v26 = vpop.xlane.xlu1 %528  ;;  %v526_v27 = vpop.xlane.xlu0 %525 }
 0x13a   : > { %1708 = vrsqrt.f32 %v533_v25  ;;  %v532_v28 = vmul.f32 0.03125, %v529_v26  ;;  %v531_v29 = vmul.f32 0.03125, %v526_v27 }
 0x13c   : > { %v535_v30 = vadd.f32 1e-06, %v532_v28  ;;  %v534_v31 = vadd.f32 1e-06, %v531_v29 }
 0x13e   : > { %1710 = vrsqrt.f32 %v535_v30 }
 0x13f   : > { %1712 = vrsqrt.f32 %v534_v31 }
 0x144   : > { %v1709_v32 = vpop.eup %1708 }
 0x145   : > { %v539_v33 = vmul.f32 %v1709_v32, %v515_v10 }
 0x147   : > { %v548_v39 = vmul.f32 %v1513_v34, %v539_v33 }
 0x148   : > { %v1711_v35 = vpop.eup %1710 }
 0x149   : > { %v1713_v36 = vpop.eup %1712  ;;  %v541_v37 = vmul.f32 %v1711_v35, %v517_v11  ;;  %v557_v44 = vadd.f32 %v1514_v40, %v548_v39 }
 0x14a   : > { %v540_v38 = vmul.f32 %v1713_v36, %v516_v16 }
 0x14b   : > { %v550_v41 = vmul.f32 %v1513_v34, %v541_v37 }
 0x14c   : > { %v549_v42 = vmul.f32 %v1513_v34, %v540_v38 }
 0x14d   : > { %v559_v43 = vadd.f32 %v1514_v40, %v550_v41 }
 0x14e   : > { %v558_v45 = vadd.f32 %v1514_v40, %v549_v42 }
 0x14f   : > { %v561_v46 = vpack.c.bf16 %v559_v43, %v559_v43 }
 0x150   : > { %v560_v47 = vpack.c.bf16 %v558_v45, %v557_v44 }
 0x152   : > { %1595 = vmatprep.mubr.msk.bf16.mxu0 %vm501_vm0, %v560_v47 }
 0x153   : > { %1596 = vmatmul.mubr.msk.bf16.vlgmr.msra.gmra.mrb[0].mxu0 %vm501_vm0, %v561_v46 }
 0x226   : > { %v1597_v49 = vpop.f32.mrb[0].mxu0 }
 0x227   : > { %v634_v50 = vadd.f32 %v1597_v49, %v1515_v48  ;;  %v625_v51 = vpop.f32.mrb[1].mxu0 }
 0x228   : > { %v626_v52 = vadd.f32 %v1515_v48, %v625_v51  ;;  %v1598_v53 = vpop.f32.mrb[2].mxu0 }
 0x229   : > { %v1902_v54 = vpack.c.bf16 %v634_v50, %v634_v50  ;;  %v628_v55 = vpop.f32.mrb[3].mxu0  ;;  %v644_v4 = vmul.f32 0.25, %v634_v50 }
 0x22a   : > { %v629_v56 = vadd.f32 %v1515_v48, %v628_v55  ;;  %v642_v57 = vmul.f32 0.25, %v626_v52 }
 0x22b   : > { %653 = vrot.lane.b32.xlu1 %v1902_v54, %s1764_s22  ;;  %v646_v5 = vpack.c.bf16 %v644_v4, %v644_v4 }
 0x22c   : > { %v643_v58 = vmul.f32 0.25, %v629_v56  ;;  %v1905_v59 = vpack.c.bf16 %v629_v56, %v626_v52 }
 0x22e   : > { %v645_v60 = vpack.c.bf16 %v643_v58, %v642_v57  ;;  %651 = vrot.lane.b32.xlu0 %v1905_v59, %s1764_s22 }
 0x230   : > { %1603 = vmatprep.mubr.msk.bf16.mxu0 %vm655_vm1, %v645_v60 }
 0x29d   : > { %v654_v63 = vpop.permute.xlu1 %653 }
 0x29e   : > { %v666_v3 = vsel %vm655_vm1, %v654_v63, 0 }
 0x2a0   : > { %v652_v61 = vpop.permute.xlu0 %651 }
 0x2a1   : > { %v663_v62 = vsel %vm655_vm1, %v652_v61, 0  ;;  %1667 = vmatprep.subr.msk.bf16.mxu0 %vm655_vm1, %v652_v61 }
 0x2a2   : > { %1600 = vmatpush3.bf16.xpose.msra.mxu0 %v663_v62 }
 0x2a3   : > { %1668 = vmatprep.subr.msk.bf16.mxu0 %vm655_vm1, %v654_v63 }
 0x2aa   : > { %1602 = vmatpush3.bf16.xpose.msra.mxu0 %v666_v3 }
 0x2b1   : > { %1604 = vmatmul.mubr.msk.bf16.vlgmr.msra.gmra.mrb[4].mxu0 %vm655_vm1, %v646_v5 }
 0x384   : > { %v1605_v8 = vpop.f32.mrb[4].mxu0 }
 0x385   : > { %v702_v9 = vpop.f32.mrb[5].mxu0  ;;  %v718_v16 = vsel %vm641_vm2, %v1605_v8, -1e+30 }
 0x386   : > { %v716_v10 = vsel %vm641_vm2, %v702_v9, -1e+30  ;;  %v1606_v11 = vpop.f32.mrb[6].mxu0  ;;  %v726_v17 = vsel %vm719_vm3, %v718_v16, -inf }
 0x387   : > { %v705_v12 = vpop.f32.mrb[7].mxu0  ;;  %v720_v13 = vsel %vm719_vm3, %v716_v10, -inf }
 0x388   : > { %v717_v14 = vsel %vm641_vm2, %v705_v12, -1e+30  ;;  %721 = vmax.xlane.f32.xlu1 %v720_v13 }
 0x389   : > { %v723_v15 = vsel %vm719_vm3, %v717_v14, -inf }
 0x38a   : > { %724 = vmax.xlane.f32.xlu0 %v723_v15 }
 0x38e   : > { %727 = vmax.xlane.f32.xlu0 %v726_v17 }
 0x415   : > { %v722_v18 = vpop.xlane.xlu1 %721 }
 0x416   : > { %v729_v21 = vsub.f32 %v716_v10, %v722_v18 }
 0x417   : > { %v725_v19 = vpop.xlane.xlu0 %724 }
 0x418   : > { %v730_v20 = vsub.f32 %v717_v14, %v725_v19  ;;  %v732_v25 = vmul.f32 1.442695, %v729_v21 }
 0x41a   : > { %v734_v22 = vmul.f32 1.442695, %v730_v20 }
 0x41b   : > { %v728_v23 = vpop.xlane.xlu0 %727 }
 0x41c   : > { %1714 = vpow2.f32 %v734_v22  ;;  %v731_v24 = vsub.f32 %v718_v16, %v728_v23 }
 0x41e   : > { %v736_v26 = vmul.f32 1.442695, %v731_v24 }
 0x420   : > { %1716 = vpow2.f32 %v736_v26 }
 0x421   : > { %1718 = vpow2.f32 %v732_v25 }
 0x426   : > { %v1715_v27 = vpop.eup %1714 }
 0x427   : > { %v741_v28 = vsel %vm719_vm3, %v1715_v27, 0.0 }
 0x428   : > { %742 = vadd.xlane.f32.xlu0 %v741_v28 }
 0x42a   : > { %v1717_v29 = vpop.eup %1716 }
 0x42b   : > { %v744_v30 = vsel %vm719_vm3, %v1717_v29, 0.0  ;;  %v1719_v31 = vpop.eup %1718 }
 0x42c   : > { %745 = vadd.xlane.f32.xlu1 %v744_v30  ;;  %v738_v32 = vsel %vm719_vm3, %v1719_v31, 0.0 }
 0x430   : > { %739 = vadd.xlane.f32.xlu1 %v738_v32 }
 0x43e   : > { %755 = vrot.lane.b32.xlu0 %v1905_v59, %s1765_s23 }
 0x441   : > { %757 = vrot.lane.b32.xlu1 %v1902_v54, %s1765_s23 }
 0x442   : > { %820 = vrot.lane.b32.xlu0 %v645_v60, %s1766_s24 }
 0x445   : > { %824 = vrot.lane.b32.xlu1 %v1905_v59, %s1767_s25 }
 0x449   : > { %826 = vrot.lane.b32.xlu1 %v1902_v54, %s1767_s25 }
 0x44d   : > { %822 = vrot.lane.b32.xlu1 %v646_v5, %s1766_s24 }
 0x4b5   : > { %v743_v33 = vpop.xlane.xlu0 %742 }
 0x4b9   : > { %v746_v34 = vpop.xlane.xlu1 %745  ;;  %v756_v35 = vpop.permute.xlu0 %755 }
 0x4ba   : > { %1607 = vmatprep.subr.bf16.mxu0 %v756_v35  ;;  %1720 = vrcp.f32 %v746_v34 }
 0x4bb   : > { %1608 = vmatpush3.bf16.msra.mxu0 %v756_v35  ;;  %1722 = vrcp.f32 %v743_v33  ;;  %v1696_v35 = vld [vmem:[%s2098_s5] sm:$0xff]  }
 0x4bd   : > { %v740_v36 = vpop.xlane.xlu1 %739  ;;  %v821_v48 = vpop.permute.xlu0 %820 }
 0x4be   : > { %1724 = vrcp.f32 %v740_v36  ;;  %v1697_v36 = vld [vmem:[%s2098_s5 + $0x8] sm:$0xff]  }
 0x4c1   : > { %v758_v37 = vpop.permute.xlu1 %757 }
 0x4c2   : > { %v768_v38 = vsel %vm766_vm4, %v758_v37, 0  ;;  %1669 = vmatprep.subr.msk.bf16.mxu0 %vm766_vm4, %v758_v37 }
 0x4c3   : > { %1610 = vmatpush3.bf16.msra.mxu0 %v768_v38 }
 0x4c4   : > { %v1721_v39 = vpop.eup %1720 }
 0x4c5   : > { %v825_v40 = vpop.permute.xlu1 %824  ;;  %v1723_v41 = vpop.eup %1722  ;;  %v752_v43 = vmul.f32 %v1721_v39, %v1717_v29 }
 0x4c6   : > { %1670 = vmatprep.subr.msk.bf16.mxu0 %vm655_vm1, %v825_v40  ;;  %v751_v45 = vmul.f32 %v1723_v41, %v1715_v27  ;;  %v835_v49 = vsel %vm655_vm1, %v825_v40, 0 }
 0x4c7   : > { %v754_v47 = vpack.c.bf16 %v752_v43, %v752_v43 }
 0x4c8   : > { %v1725_v42 = vpop.eup %1724 }
 0x4c9   : > { %v750_v44 = vmul.f32 %v1725_v42, %v1719_v31  ;;  %v827_v50 = vpop.permute.xlu1 %826 }
 0x4ca   : > { %v838_v51 = vsel %vm655_vm1, %v827_v50, 0 }
 0x4cb   : > { %v753_v46 = vpack.c.bf16 %v751_v45, %v750_v44 }
 0x4cd   : > { %1611 = vmatprep.mubr.msk.bf16.mxu0 %vm719_vm3, %v753_v46  ;;  %v823_v52 = vpop.permute.xlu1 %822 }
 0x4ce   : > { %1612 = vmatmul.mubr.msk.bf16.vlgmr.msra.gmra.mrb[8].mxu0 %vm719_vm3, %v754_v47 }
 0x4cf   : > { %1616 = vmatpush3.bf16.xpose.msra.mxu0 %v835_v49  ;;  %1619 = vmatprep.mubr.msk.bf16.mxu0 %vm655_vm1, %v821_v48 }
 0x4d0   : > { %1671 = vmatprep.subr.msk.bf16.mxu0 %vm655_vm1, %v827_v50 }
 0x4d7   : > { %1618 = vmatpush3.bf16.xpose.msra.mxu0 %v838_v51  ;;  %v1528_v51 = vld [vmem:[%s2099_s6] ss:$0 sm:$0xff] }
 0x4de   : > { %1620 = vmatmul.mubr.msk.bf16.vlgmr.msra.gmra.mrb[12].mxu0 %vm655_vm1, %v823_v52 }
 0x5a1   : > { %v1943_v53 = vpop.f32.mrb[8].mxu0 }
 0x5a2   : > { %v1945_v55 = vpop.f32.mrb[9].mxu0 }
 0x5a3   : > { %v1614_v56 = vpop.f32.mrb[10].mxu0 }
 0x5a4   : > { %v1947_v57 = vpop.f32.mrb[11].mxu0 }
 0x5b1   : > { %v1621_v58 = vpop.f32.mrb[12].mxu0 }
 0x5b2   : > { %v874_v60 = vpop.f32.mrb[13].mxu0  ;;  %v890_v4 = vsel %vm641_vm2, %v1621_v58, -1e+30 }
 0x5b3   : > { %v888_v61 = vsel %vm641_vm2, %v874_v60, -1e+30  ;;  %v1622_v62 = vpop.f32.mrb[14].mxu0  ;;  %v897_v8 = vsel %vm719_vm3, %v890_v4, -inf }
 0x5b4   : > { %v877_v63 = vpop.f32.mrb[15].mxu0  ;;  %v891_v3 = vsel %vm719_vm3, %v888_v61, -inf }
 0x5b5   : > { %v889_v5 = vsel %vm641_vm2, %v877_v63, -1e+30  ;;  %892 = vmax.xlane.f32.xlu0 %v891_v3 }
 0x5b6   : > { %v894_v6 = vsel %vm719_vm3, %v889_v5, -inf }
 0x5b7   : > { %895 = vmax.xlane.f32.xlu1 %v894_v6 }
 0x5b9   : > { %898 = vmax.xlane.f32.xlu0 %v897_v8 }
 0x642   : > { %v893_v9 = vpop.xlane.xlu0 %892 }
 0x643   : > { %v900_v10 = vsub.f32 %v888_v61, %v893_v9 }
 0x644   : > { %v896_v11 = vpop.xlane.xlu1 %895 }
 0x645   : > { %v903_v12 = vmul.f32 1.442695, %v900_v10  ;;  %v901_v13 = vsub.f32 %v889_v5, %v896_v11 }
 0x646   : > { %v899_v14 = vpop.xlane.xlu0 %898 }
 0x647   : > { %1726 = vpow2.f32 %v903_v12  ;;  %v905_v15 = vmul.f32 1.442695, %v901_v13  ;;  %v902_v16 = vsub.f32 %v890_v4, %v899_v14 }
 0x649   : > { %1728 = vpow2.f32 %v905_v15  ;;  %v907_v17 = vmul.f32 1.442695, %v902_v16 }
 0x64b   : > { %1730 = vpow2.f32 %v907_v17 }
 0x651   : > { %v1727_v7 = vpop.eup %1726 }
 0x652   : > { %v909_v18 = vsel %vm719_vm3, %v1727_v7, 0.0 }
 0x653   : > { %v1729_v19 = vpop.eup %1728  ;;  %910 = vadd.xlane.f32.xlu0 %v909_v18 }
 0x654   : > { %v912_v22 = vsel %vm719_vm3, %v1729_v19, 0.0 }
 0x655   : > { %v1731_v20 = vpop.eup %1730 }
 0x656   : > { %v915_v21 = vsel %vm719_vm3, %v1731_v20, 0.0 }
 0x657   : > { %916 = vadd.xlane.f32.xlu1 %v915_v21  ;;  %913 = vadd.xlane.f32.xlu0 %v912_v22  ;;  %v1698_v22 = vld [vmem:[%s2103_s10] sm:$0xff]  }
 0x658   : > { %1639 = vmatprep.subr.bf16.mxu0 %v1698_v22 }
 0x659   : > { %1640 = vmatpush3.bf16.msra.mxu0 %v1698_v22 }
 0x668   : > { %928 = vrot.lane.b32.xlu1 %v1902_v54, %s1768_s26 }
 0x66d   : > { %926 = vrot.lane.b32.xlu0 %v1905_v59, %s1768_s26 }
 0x6e0   : > { %v911_v23 = vpop.xlane.xlu0 %910 }
 0x6e1   : > { %1732 = vrcp.f32 %v911_v23  ;;  %v1699_v23 = vld [vmem:[%s2103_s10 + $0x8] sm:$0xff]  }
 0x6e2   : > { %1641 = vmatprep.subr.bf16.mxu0 %v1699_v23 }
 0x6e3   : > { %1642 = vmatpush3.bf16.msra.mxu0 %v1699_v23 }
 0x6e4   : > { %v914_v24 = vpop.xlane.xlu0 %913  ;;  %v917_v25 = vpop.xlane.xlu1 %916 }
 0x6e5   : > { %1734 = vrcp.f32 %v914_v24 }
 0x6e6   : > { %1736 = vrcp.f32 %v917_v25 }
 0x6e8   : > { %v927_v26 = vpop.permute.xlu0 %926  ;;  %v929_v27 = vpop.permute.xlu1 %928 }
 0x6e9   : > { %1623 = vmatprep.subr.bf16.mxu1 %v927_v26  ;;  %v938_v29 = vsel %vm766_vm4, %v929_v27, 0 }
 0x6ea   : > { %1624 = vmatpush3.bf16.msra.mxu1 %v927_v26 }
 0x6eb   : > { %1672 = vmatprep.subr.msk.bf16.mxu1 %vm766_vm4, %v929_v27  ;;  %v1733_v28 = vpop.eup %1732 }
 0x6ec   : > { %v921_v31 = vmul.f32 %v1733_v28, %v1727_v7 }
 0x6ee   : > { %1626 = vmatpush3.bf16.msra.mxu1 %v938_v29 }
 0x6ef   : > { %v1735_v30 = vpop.eup %1734  ;;  %1631 = vmatprep.subr.bf16.mxu1 %v1696_v35 }
 0x6f0   : > { %v1737_v54 = vpop.eup %1736  ;;  %v922_v59 = vmul.f32 %v1735_v30, %v1729_v19 }
 0x6f1   : > { %v923_v32 = vmul.f32 %v1737_v54, %v1731_v20 }
 0x6f2   : > { %v924_v33 = vpack.c.bf16 %v922_v59, %v921_v31 }
 0x6f3   : > { %v925_v34 = vpack.c.bf16 %v923_v32, %v923_v32 }
 0x6f4   : > { %1627 = vmatprep.mubr.msk.bf16.mxu1 %vm719_vm3, %v924_v33  ;;  %v1534_v33 = vld [vmem:[%s2101_s8] ss:$0 sm:$0xff] }
 0x6f5   : > { %1628 = vmatmul.mubr.msk.bf16.vlgmr.msra.gmra.mrb[0].mxu1 %vm719_vm3, %v925_v34 }
 0x6f6   : > { %1632 = vmatpush3.bf16.msra.mxu1 %v1696_v35 }
 0x6f7   : > { %1633 = vmatprep.subr.bf16.mxu1 %v1697_v36 }
 0x6fa   : > { %1634 = vmatpush3.bf16.msra.mxu1 %v1697_v36 }
 0x7c8   : > { %v1629_v37 = vpop.f32.mrb[0].mxu1 }
 0x7c9   : > { %v974_v38 = vpop.f32.mrb[1].mxu1 }
 0x7ca   : > { %v1630_v39 = vpop.f32.mrb[2].mxu1 }
 0x7cb   : > { %v977_v40 = vpop.f32.mrb[3].mxu1 }
 0x7cc   : > { %v1689_v41 = vpack.i.bf16 %v977_v40, %v974_v38  ;;  %v1535_v40 = vld [vmem:[%s2102_s9] ss:$0 sm:$0xff] }
 0x7ce   : > { %1690 = vrot.lane.b32.xlu1 %v1689_v41, %s1769_s16 }
 0x7d2   : > { %995 = vrot.lane.b32.xlu1 %v1629_v37, %s1769_s16 }
 0x840   : > { %v1691_v42 = vpop.permute.xlu1 %1690 }
 0x841   : > { %v1693_v43 = vunpack.i.h.bf16 %v1691_v42  ;;  %v1692_v44 = vunpack.i.l.bf16 %v1691_v42 }
 0x843   : > { %v1001_v45 = vsel %vm655_vm1, %v1947_v57, %v1693_v43  ;;  %v1000_v46 = vsel %vm655_vm1, %v1945_v55, %v1692_v44  ;;  %v1533_v55 = vld [vmem:[%s2100_s7] ss:$0 sm:$0xff] }
 0x844   : > { %v1003_v47 = vpack.c.bf16 %v1001_v45, %v1000_v46  ;;  %v996_v48 = vpop.permute.xlu1 %995 }
 0x845   : > { %v1002_v49 = vsel %vm655_vm1, %v1943_v53, %v996_v48  ;;  %v1701_v48 = vld [vmem:[%s2105_s12 + $0x8] sm:$0xff]  }
 0x846   : > { %v1004_v50 = vpack.c.bf16 %v1002_v49, %v1002_v49  ;;  %1635 = vmatprep.mubr.msk.bf16.mxu1 %vm501_vm0, %v1003_v47  ;;  %v1700_v47 = vld [vmem:[%s2105_s12] sm:$0xff]   ;;  %v1702_v49 = vld [vmem:[%s2105_s12 + $0x10] sm:$0xff]  }
 0x847   : > { %1647 = vmatprep.subr.bf16.mxu1 %v1700_v47 }
 0x848   : > { %1636 = vmatmul.mubr.msk.bf16.vlgmr.msra.gmra.mrb[4].mxu1 %vm501_vm0, %v1004_v50  ;;  %v1703_v50 = vld [vmem:[%s2105_s12 + $0x18] sm:$0xff]  }
 0x849   : > { %1648 = vmatpush3.bf16.msra.mxu1 %v1700_v47 }
 0x84a   : > { %1649 = vmatprep.subr.bf16.mxu1 %v1701_v48 }
 0x84d   : > { %1650 = vmatpush3.bf16.msra.mxu1 %v1701_v48 }
 0x84e   : > { %1651 = vmatprep.subr.bf16.mxu1 %v1702_v49 }
 0x851   : > { %1652 = vmatpush3.bf16.msra.mxu1 %v1702_v49 }
 0x852   : > { %1653 = vmatprep.subr.bf16.mxu1 %v1703_v50 }
 0x855   : > { %1654 = vmatpush3.bf16.msra.mxu1 %v1703_v50 }
 0x91b   : > { %v1637_v52 = vpop.f32.mrb[4].mxu1 }
 0x91c   : > { %v1077_v56 = vadd.f32 %v1637_v52, %v1528_v51  ;;  %v1068_v57 = vpop.f32.mrb[5].mxu1  ;;  %v1705_v52 = vld [vmem:[%s2105_s12 + $0x28] sm:$0xff]  }
 0x91d   : > { %v1069_v58 = vadd.f32 %v1528_v51, %v1068_v57  ;;  %v1638_v60 = vpop.f32.mrb[6].mxu1  ;;  %v1536_v57 = vld [vmem:[%s2104_s11] ss:$0 sm:$0xff] }
 0x91e   : > { %v1071_v61 = vpop.f32.mrb[7].mxu1  ;;  %v1091_v53 = vmul.f32 %v1533_v55, %v1077_v56  ;;  %v1706_v56 = vld [vmem:[%s2105_s12 + $0x30] sm:$0xff]  }
 0x91f   : > { %v1089_v62 = vmul.f32 %v1533_v55, %v1069_v58  ;;  %v1072_v63 = vadd.f32 %v1528_v51, %v1071_v61  ;;  %v1704_v51 = vld [vmem:[%s2105_s12 + $0x20] sm:$0xff]  }
 0x920   : > { %v1991_v5 = vadd.f32 %v1091_v53, %v1869_v1  ;;  %1655 = vmatprep.subr.bf16.mxu1 %v1704_v51 }
 0x921   : > { %v1988_v3 = vadd.f32 %v1089_v62, %v1867_v0  ;;  %v1090_v4 = vmul.f32 %v1533_v55, %v1072_v63  ;;  %1656 = vmatpush3.bf16.msra.mxu1 %v1704_v51  ;;  %v1707_v55 = vld [vmem:[%s2105_s12 + $0x38] sm:$0xff]  }
 0x922   : > { %v1103_v10 = vsel %vm501_vm0, %v1991_v5, 0.0  ;;  %1657 = vmatprep.subr.bf16.mxu1 %v1705_v52 }
 0x923   : > { %v1994_v6 = vadd.f32 %v1090_v4, %v1871_v2  ;;  %v1097_v8 = vsel %vm501_vm0, %v1988_v3, 0.0 }
 0x924   : > { %1098 = vadd.xlane.f32.xlu0 %v1097_v8 }
 0x925   : > { %v1100_v9 = vsel %vm501_vm0, %v1994_v6, 0.0  ;;  %1658 = vmatpush3.bf16.msra.mxu1 %v1705_v52 }
 0x926   : > { %1101 = vadd.xlane.f32.xlu1 %v1100_v9  ;;  %1659 = vmatprep.subr.bf16.mxu1 %v1706_v56 }
 0x928   : > { %1104 = vadd.xlane.f32.xlu0 %v1103_v10 }
 0x929   : > { %1660 = vmatpush3.bf16.msra.mxu1 %v1706_v56 }
 0x92a   : > { %1661 = vmatprep.subr.bf16.mxu1 %v1707_v55 }
 0x92d   : > { %1662 = vmatpush3.bf16.msra.mxu1 %v1707_v55 }
 0x9b1   : > { %v1099_v0 = vpop.xlane.xlu0 %1098 }
 0x9b2   : > { %v1106_v11 = vmul.f32 0.03125, %v1099_v0 }
 0x9b3   : > { %v1102_v12 = vpop.xlane.xlu1 %1101 }
 0x9b4   : > { %v1109_v1 = vsub.f32 %v1988_v3, %v1106_v11  ;;  %v1107_v13 = vmul.f32 0.03125, %v1102_v12 }
 0x9b5   : > { %v1105_v2 = vpop.xlane.xlu0 %1104 }
 0x9b6   : > { %v1110_v14 = vsub.f32 %v1994_v6, %v1107_v13  ;;  %v1108_v15 = vmul.f32 0.03125, %v1105_v2  ;;  %v1112_v16 = vmul.f32 %v1109_v1, %v1109_v1 }
 0x9b8   : > { %v1111_v17 = vsub.f32 %v1991_v5, %v1108_v15  ;;  %v1115_v7 = vsel %vm501_vm0, %v1112_v16, 0.0  ;;  %v1113_v18 = vmul.f32 %v1110_v14, %v1110_v14 }
 0x9b9   : > { %1116 = vadd.xlane.f32.xlu0 %v1115_v7 }
 0x9ba   : > { %v1114_v19 = vmul.f32 %v1111_v17, %v1111_v17  ;;  %v1118_v20 = vsel %vm501_vm0, %v1113_v18, 0.0 }
 0x9bc   : > { %v1121_v21 = vsel %vm501_vm0, %v1114_v19, 0.0 }
 0x9bd   : > { %1119 = vadd.xlane.f32.xlu0 %v1118_v20  ;;  %1122 = vadd.xlane.f32.xlu1 %v1121_v21 }
 0xa46   : > { %v1117_v24 = vpop.xlane.xlu0 %1116 }
 0xa47   : > { %v1124_v25 = vmul.f32 0.03125, %v1117_v24 }
 0xa49   : > { %v1127_v26 = vadd.f32 1e-06, %v1124_v25 }
 0xa4a   : > { %v1123_v27 = vpop.xlane.xlu1 %1122  ;;  %v1120_v28 = vpop.xlane.xlu0 %1119 }
 0xa4b   : > { %1738 = vrsqrt.f32 %v1127_v26  ;;  %v1126_v29 = vmul.f32 0.03125, %v1123_v27  ;;  %v1125_v30 = vmul.f32 0.03125, %v1120_v28 }
 0xa4d   : > { %v1129_v54 = vadd.f32 1e-06, %v1126_v29  ;;  %v1128_v31 = vadd.f32 1e-06, %v1125_v30 }
 0xa4f   : > { %1740 = vrsqrt.f32 %v1129_v54 }
 0xa50   : > { %1742 = vrsqrt.f32 %v1128_v31 }
 0xa55   : > { %v1739_v59 = vpop.eup %1738 }
 0xa56   : > { %v1133_v32 = vmul.f32 %v1739_v59, %v1109_v1 }
 0xa58   : > { %v1142_v38 = vmul.f32 %v1534_v33, %v1133_v32 }
 0xa59   : > { %v1741_v34 = vpop.eup %1740 }
 0xa5a   : > { %v1743_v35 = vpop.eup %1742  ;;  %v1135_v36 = vmul.f32 %v1741_v34, %v1111_v17  ;;  %v1151_v43 = vadd.f32 %v1535_v40, %v1142_v38 }
 0xa5b   : > { %v1134_v37 = vmul.f32 %v1743_v35, %v1110_v14 }
 0xa5c   : > { %v1144_v39 = vmul.f32 %v1534_v33, %v1135_v36 }
 0xa5d   : > { %v1143_v41 = vmul.f32 %v1534_v33, %v1134_v37 }
 0xa5e   : > { %v1153_v42 = vadd.f32 %v1535_v40, %v1144_v39 }
 0xa5f   : > { %v1152_v44 = vadd.f32 %v1535_v40, %v1143_v41 }
 0xa60   : > { %v1155_v45 = vpack.c.bf16 %v1153_v42, %v1153_v42 }
 0xa61   : > { %v1154_v46 = vpack.c.bf16 %v1152_v44, %v1151_v43 }
 0xa63   : > { %1643 = vmatprep.mubr.msk.bf16.mxu0 %vm501_vm0, %v1154_v46 }
 0xa64   : > { %1644 = vmatmul.mubr.msk.bf16.vlgmr.msra.gmra.mrb[16].mxu0 %vm501_vm0, %v1155_v45 }
 0xb37   : > { %v1645_v58 = vpop.f32.mrb[16].mxu0 }
 0xb38   : > { %v2049_v60 = vadd.f32 %v1645_v58, %v1536_v57  ;;  %v1219_v61 = vpop.f32.mrb[17].mxu0 }
 0xb39   : > { %v2051_v53 = vadd.f32 %v1536_v57, %v1219_v61  ;;  %v1646_v62 = vpop.f32.mrb[18].mxu0 }
 0xb3a   : > { %v2054_v63 = vmul.f32 0.70710677, %v2049_v60  ;;  %v1222_v4 = vpop.f32.mrb[19].mxu0 }
 0xb3b   : > { %v2057_v8 = vmul.f32 0.70710677, %v2051_v53  ;;  %v2059_v9 = vadd.f32 %v1536_v57, %v1222_v4  ;;  %v1770_v4 = vmov -1.0  }
 0xb3c   : > { %v1247_v10 = vand.u32 2147483647, %v2054_v63  ;;  %vm1241_vm5 = vcmp.ge.f32.partialorder %v2054_v63, 0.0 }
 0xb3d   : > { %v1245_v0 = vand.u32 2147483647, %v2057_v8  ;;  %v2064_v12 = vmul.f32 0.70710677, %v2059_v9  ;;  %vm1239_vm6 = vcmp.ge.f32.partialorder %v2057_v8, 0.0  ;;  %v1235_v8 = vmul.f32 0.5, %v2049_v60 }
 0xb3e   : > { %v1250_v11 = vmul.f32 0.3275911, %v1247_v10  ;;  %v1289_v17 = vsub.f32 0.0, %v1247_v10  ;;  %v1550_v60 = vld [vmem:[%s2107_s14] ss:$0 sm:$0xff] }
 0xb3f   : > { %v1248_v1 = vmul.f32 0.3275911, %v1245_v0  ;;  %v1246_v2 = vand.u32 2147483647, %v2064_v12  ;;  %v1287_v7 = vsub.f32 0.0, %v1245_v0  ;;  %vm1240_vm7 = vcmp.ge.f32.partialorder %v2064_v12, 0.0 }
 0xb40   : > { %v1253_v13 = vadd.f32 1.0, %v1250_v11  ;;  %v1292_v19 = vmul.f32 %v1289_v17, %v1247_v10  ;;  %v1244_v10 = vsel %vm1241_vm5, 1.0, %v1770_v4  ;;  %v1243_v63 = vsel %vm1240_vm7, 1.0, %v1770_v4 }
 0xb41   : > { %v1251_v14 = vadd.f32 1.0, %v1248_v1  ;;  %v1249_v15 = vmul.f32 0.3275911, %v1246_v2  ;;  %v1288_v20 = vsub.f32 0.0, %v1246_v2  ;;  %v1290_v23 = vmul.f32 %v1287_v7, %v1245_v0 }
 0xb42   : > { %1744 = vrcp.f32 %v1253_v13  ;;  %v1297_v27 = vmul.f32 1.442695, %v1292_v19  ;;  %v1242_v1 = vsel %vm1239_vm6, 1.0, %v1770_v4  ;;  %v1233_v7 = vmul.f32 0.5, %v2051_v53 }
 0xb43   : > { %1746 = vrcp.f32 %v1251_v14  ;;  %v1252_v16 = vadd.f32 1.0, %v1249_v15  ;;  %v1291_v29 = vmul.f32 %v1288_v20, %v1246_v2  ;;  %v1293_v54 = vmul.f32 1.442695, %v1290_v23 }
 0xb45   : > { %1748 = vrcp.f32 %v1252_v16  ;;  %v1295_v35 = vmul.f32 1.442695, %v1291_v29 }
 0xb46   : > { %1750 = vpow2.f32 %v1297_v27 }
 0xb47   : > { %1752 = vpow2.f32 %v1293_v54 }
 0xb48   : > { %1754 = vpow2.f32 %v1295_v35 }
 0xb4c   : > { %v1745_v18 = vpop.eup %1744 }
 0xb4d   : > { %v1747_v21 = vpop.eup %1746  ;;  %v1262_v22 = vmul.f32 1.0614054, %v1745_v18 }
 0xb4e   : > { %v1260_v24 = vmul.f32 1.0614054, %v1747_v21 }
 0xb4f   : > { %v1265_v25 = vadd.f32 -1.4531521, %v1262_v22  ;;  %v1749_v26 = vpop.eup %1748 }
 0xb50   : > { %v1263_v28 = vadd.f32 -1.4531521, %v1260_v24  ;;  %v1261_v31 = vmul.f32 1.0614054, %v1749_v26  ;;  %v1751_v50 = vpop.eup %1750  ;;  %v1541_v24 = vld [vmem:[%s2106_s13] ss:$0 sm:$0xff] }
 0xb51   : > { %v1268_v30 = vmul.f32 %v1745_v18, %v1265_v25  ;;  %v1753_v52 = vpop.eup %1752 }
 0xb52   : > { %v1266_v59 = vmul.f32 %v1747_v21, %v1263_v28  ;;  %v1264_v33 = vadd.f32 -1.4531521, %v1261_v31  ;;  %v1755_v62 = vpop.eup %1754 }
 0xb53   : > { %v1271_v32 = vadd.f32 1.4214138, %v1268_v30 }
 0xb54   : > { %v1269_v34 = vadd.f32 1.4214138, %v1266_v59  ;;  %v1267_v37 = vmul.f32 %v1749_v26, %v1264_v33 }
 0xb55   : > { %v1274_v36 = vmul.f32 %v1745_v18, %v1271_v32 }
 0xb56   : > { %v1272_v38 = vmul.f32 %v1747_v21, %v1269_v34  ;;  %v1270_v40 = vadd.f32 1.4214138, %v1267_v37 }
 0xb57   : > { %v1277_v39 = vadd.f32 -0.28449672, %v1274_v36 }
 0xb58   : > { %v1275_v41 = vadd.f32 -0.28449672, %v1272_v38  ;;  %v1273_v43 = vmul.f32 %v1749_v26, %v1270_v40 }
 0xb59   : > { %v1280_v42 = vmul.f32 %v1745_v18, %v1277_v39 }
 0xb5a   : > { %v1278_v44 = vmul.f32 %v1747_v21, %v1275_v41  ;;  %v1276_v46 = vadd.f32 -0.28449672, %v1273_v43 }
 0xb5b   : > { %v1283_v45 = vadd.f32 0.2548296, %v1280_v42 }
 0xb5c   : > { %v1281_v47 = vadd.f32 0.2548296, %v1278_v44  ;;  %v1279_v49 = vmul.f32 %v1749_v26, %v1276_v46 }
 0xb5d   : > { %v1286_v48 = vmul.f32 %v1745_v18, %v1283_v45  ;;  %v1234_v18 = vmul.f32 0.5, %v2059_v9 }
 0xb5e   : > { %v1284_v51 = vmul.f32 %v1747_v21, %v1281_v47  ;;  %v1282_v55 = vadd.f32 0.2548296, %v1279_v49 }
 0xb5f   : > { %v1301_v56 = vmul.f32 %v1751_v50, %v1286_v48 }
 0xb60   : > { %v1299_v57 = vmul.f32 %v1753_v52, %v1284_v51  ;;  %v1285_v61 = vmul.f32 %v1749_v26, %v1282_v55 }
 0xb61   : > { %v1304_v58 = vsub.f32 1.0, %v1301_v56 }
 0xb62   : > { %v1302_v0 = vsub.f32 1.0, %v1299_v57  ;;  %v1300_v13 = vmul.f32 %v1755_v62, %v1285_v61 }
 0xb63   : > { %v1307_v11 = vmul.f32 %v1304_v58, %v1244_v10 }
 0xb64   : > { %v1305_v2 = vmul.f32 %v1302_v0, %v1242_v1  ;;  %v1303_v14 = vsub.f32 1.0, %v1300_v13 }
 0xb65   : > { %v1310_v15 = vadd.f32 1.0, %v1307_v11 }
 0xb66   : > { %v1308_v16 = vadd.f32 1.0, %v1305_v2  ;;  %v1306_v17 = vmul.f32 %v1303_v14, %v1243_v63 }
 0xb67   : > { %v1313_v20 = vmul.f32 %v1310_v15, %v1235_v8 }
 0xb68   : > { %v1309_v19 = vadd.f32 1.0, %v1306_v17  ;;  %v1311_v21 = vmul.f32 %v1308_v16, %v1233_v7 }
 0xb69   : > { %v1315_v12 = vpack.c.bf16 %v1313_v20, %v1313_v20 }
 0xb6a   : > { %v1312_v22 = vmul.f32 %v1309_v19, %v1234_v18 }
 0xb6c   : > { %v1314_v23 = vpack.c.bf16 %v1312_v22, %v1311_v21 }
 0xb6e   : > { %1663 = vmatprep.mubr.bf16.mxu1 %v1314_v23 }
 0xb6f   : > { %1664 = vmatmul.mubr.bf16.vlgmr.msra.gmra.mrb[8].mxu1 %v1315_v12 }
 0xc42   : > { %v1665_v25 = vpop.f32.mrb[8].mxu1 }
 0xc43   : > { %v1430_v53 = vadd.f32 %v1665_v25, %v1541_v24  ;;  %v1421_v9 = vpop.f32.mrb[9].mxu1 }
 0xc44   : > { %v1422_v26 = vadd.f32 %v1541_v24, %v1421_v9  ;;  %v1666_v27 = vpop.f32.mrb[10].mxu1 }
 0xc45   : > { %v1444_v28 = vmul.f32 %v1550_v60, %v1430_v53  ;;  %v1424_v29 = vpop.f32.mrb[11].mxu1 }
 0xc46   : > { %v1442_v30 = vmul.f32 %v1550_v60, %v1422_v26  ;;  %v1425_v54 = vadd.f32 %v1541_v24, %v1424_v29 }
 0xc47   : > { %v1447_v31 = vadd.f32 %v1444_v28, %v1991_v5 }
 0xc48   : > { %v1445_v59 = vadd.f32 %v1442_v30, %v1988_v3  ;;  %v1443_v32 = vmul.f32 %v1550_v60, %v1425_v54 }
 0xc49   : > { %1450 = vst.msk [vmem:[%s494_s17 + $0x10] sm:$0xff] %vm501_vm0, %v1447_v31 }
 0xc4a   : > { %1448 = vst.msk [vmem:[%s494_s17] sm:$0xff] %vm501_vm0, %v1445_v59  ;;  %v1446_v33 = vadd.f32 %v1443_v32, %v1994_v6 }
 0xc4c   : > { %1449 = vst.msk [vmem:[%s494_s17 + $0x8] sm:$0xff] %vm501_vm0, %v1446_v33 }
 0xc4d PF: > { %s25_s18 = sadd.s32 1, %s1762_s18  }
 0xc4e   : > { %p22_p4 = scmp.ge.s32.totalorder %s25_s18, 4  }
 0xc50   :  { %24 = sbr.rel (!%p22_p4) target bundleno = 1 (0x1), region = 110 }

</bundles_post_ra>
